<compile_context>
chip_gen: v7x
topology: tpu7x:2x2x1
jax: 0.10.0
libtpu: 0.0.40
codegen_flags: <defaults>
</compile_context>

<pallas_src>
import functools
import math

import numpy as np
import jax
import jax.numpy as jnp
from jax.experimental import pallas as pl
from jax.experimental.pallas import tpu as pltpu

LN_EPS = 1e-5
# Keep f32 matmuls exact enough that the matmul-based group mean/var matches an
# exact jnp.mean-based LayerNorm.  Do NOT lower the two stats matmuls below
# HIGHEST (single-pass bf16 degrades LN stats to ~1e-3 rel error).
_PRECISION = jax.lax.Precision.HIGHEST


# ----------------------------------------------------------------------------
# Pallas kernel: fused grouped-LayerNorm + projection on a packed, lane-dense tile
# ----------------------------------------------------------------------------
def se_forward_kernel(x_ref, s_ref, w_ref, b_ref, o_ref, *, inv_f):
    """x_ref: [TM, pack*F]            pack original rows packed along lanes
       s_ref: [pack*F, pack*F]        block-diag 0/1 group-sum matrix
       w_ref: [pack*F, pack*se_dim]   kron(I_pack, diag(gamma) @ W)
       b_ref: [1, pack*se_dim]        tiled (beta @ W + b)
       o_ref: [TM, pack*se_dim]       lane-dense output slab
    """
    x = x_ref[...].astype(jnp.float32)
    s = s_ref[...]
    # Per-lane group mean (each group of F lanes is one original row).
    mean = jnp.dot(x, s, precision=_PRECISION,
                   preferred_element_type=jnp.float32) * inv_f
    c = x - mean
    # Biased variance, matching nn.LayerNorm.
    var = jnp.dot(c * c, s, precision=_PRECISION,
                  preferred_element_type=jnp.float32) * inv_f
    x_hat = c * jax.lax.rsqrt(var + LN_EPS)
    out = jnp.dot(x_hat, w_ref[...], precision=_PRECISION,
                  preferred_element_type=jnp.float32) + b_ref[...]
    o_ref[...] = out.astype(o_ref.dtype)


# ----------------------------------------------------------------------------
# Wrapper helpers
# ----------------------------------------------------------------------------
def _round_up(x, m):
    return ((x + m - 1) // m) * m


def _cdiv(a, b):
    return -(-a // b)


def _default_pack_cap():
    """pack<=8 on v5e keeps the redundant block-diag matmuls under the HBM
    budget (weak MXU + HIGHEST-precision emulation); 16 elsewhere."""
    try:
        kind = jax.devices()[0].device_kind.lower()
    except Exception:
        return 16
    if ("v5 lite" in kind) or ("v5e" in kind) or ("v5lite" in kind):
        return 8
    return 16


def _pick_pack(f, se_dim, pack_cap=None):
    """Rows packed per lane-dense output row: pack*se_dim must be a multiple of
    128 (unmasked stores) and pack*F <= 128 (input fits one vreg lane span)."""
    base = 128 // math.gcd(128, int(se_dim))
    if base * f > 128:
        # TODO(synk): awkward se_dim (lane-dense output needs >128 input lanes);
        # fall back to unpacked layout -> masked partial stores, slower path.
        return 1
    if pack_cap is None:
        pack_cap = _default_pack_cap()
    pack = (min(int(pack_cap), 128 // f) // base) * base
    return max(pack, base)


def pack_encodings(encodings, se_dim, *, tile_m=32768, pack=None, pack_cap=None):
    """__init__-time step: zero-pad N to the tile and pack `pack` consecutive
    rows along the lane axis (free row-major reshape).  Do this ONCE per graph
    and reuse (x_packed, meta) for every forward call -> copy-free input path.
    """
    x = jnp.asarray(encodings, jnp.float32)
    n, f = x.shape
    if pack is None:
        pack = _pick_pack(f, se_dim, pack_cap)

    n_p = _cdiv(n, pack)                                   # packed rows
    tile_mp_req = max(8, ((max(int(tile_m), pack) // pack) // 8) * 8)
    g = _cdiv(n_p, tile_mp_req)
    if g == 1:
        if _round_up(n_p, 8) >= 16:
            g = 2                  # >=2 steps when data allows (v7x megacore)
    elif g % 2 == 1:
        g += 1                     # even step count: both v7x TCs stay busy
    tile_mp = _round_up(_cdiv(n_p, g), 8)
    n_p_pad = tile_mp * g
    n_pad = n_p_pad * pack

    if n_pad != n:
        # Zero rows -> finite output (LN_EPS>0 in rsqrt) -> trimmed afterwards.
        x = jnp.pad(x, ((0, n_pad - n), (0, 0)))
    x_packed = x.reshape(n_p_pad, pack * f)                # same HBM bits

    meta = dict(n=n, f=f, se_dim=int(se_dim), pack=pack,
                tile_mp=tile_mp, grid=g, n_p_pad=n_p_pad)
    return x_packed, meta


def hypergraph_se_forward_packed(x_packed, gamma, beta, w, b, meta, *,
                                 out_dtype=jnp.float32):
    """Forward on a pre-packed [n_p_pad, pack*F] array.  Returns the packed
    padded output slab [n_p_pad, pack*se_dim] (use unpack_se_output to trim,
    or consume the slab directly to avoid any trim copy)."""
    f, se_dim, pack = meta["f"], meta["se_dim"], meta["pack"]
    tile_mp, g, n_p_pad = meta["tile_mp"], meta["grid"], meta["n_p_pad"]

    gamma = jnp.asarray(gamma, jnp.float32)
    beta = jnp.asarray(beta, jnp.float32)
    w = jnp.asarray(w, jnp.float32)
    b = jnp.asarray(b, jnp.float32)

    # Fold LayerNorm affine into the projection:
    #   (x_hat*gamma + beta) @ W + b == x_hat @ (diag(gamma)@W) + (beta@W + b)
    w_eff = gamma[:, None] * w                              # [F, se_dim]
    b_eff = beta @ w + b                                    # [se_dim]

    # Block-diagonal expansions for the packed (lane-dense) layout.
    eye_p = jnp.eye(pack, dtype=jnp.float32)
    s_mat = jnp.kron(eye_p, jnp.ones((f, f), jnp.float32))  # [pack*F, pack*F]
    w_blk = jnp.kron(eye_p, w_eff)                          # [pack*F, pack*se_dim]
    b_blk = jnp.tile(b_eff, (pack,)).reshape(1, pack * se_dim)

    out_bytes = jnp.dtype(out_dtype).itemsize
    in_tile_bytes = tile_mp * pack * f * 4
    out_tile_bytes = tile_mp * pack * se_dim * out_bytes
    const_bytes = (pack * f * pack * f + pack * f * pack * se_dim
                   + pack * se_dim) * 4
    # Double-buffered inputs/outputs/constants (default pipeline mode).
    vmem_needed = 2 * (in_tile_bytes + out_tile_bytes + const_bytes)
    vmem_limit = None
    if vmem_needed > 12 * 1024 * 1024:
        # Only bump past the (16/32 MiB) scoped default when big tiles need it;
        # stay well under v7x's 64 MiB physical VMEM.
        vmem_limit = min(int(vmem_needed * 1.5) + (2 << 20), 48 << 20)

    # Advisory HBM-bound hint for XLA's scheduler.
    cost = pl.CostEstimate(
        flops=2 * n_p_pad * (2 * (pack * f) ** 2 + (pack * f) * (pack * se_dim)),
        transcendentals=n_p_pad * pack * f,
        bytes_accessed=n_p_pad * pack * f * 4
                       + n_p_pad * pack * se_dim * out_bytes
                       + const_bytes)

    kernel = functools.partial(se_forward_kernel, inv_f=1.0 / f)

    return pl.pallas_call(
        kernel,
        out_shape=jax.ShapeDtypeStruct((n_p_pad, pack * se_dim), out_dtype),
        grid_spec=pltpu.PrefetchScalarGridSpec(
            num_scalar_prefetch=0,
            grid=(g,),
            in_specs=[
                pl.BlockSpec((tile_mp, pack * f), lambda i: (i, 0)),        # packed rows
                pl.BlockSpec((pack * f, pack * f), lambda i: (0, 0)),       # group-sum matrix
                pl.BlockSpec((pack * f, pack * se_dim), lambda i: (0, 0)),  # block-diag weight
                pl.BlockSpec((1, pack * se_dim), lambda i: (0, 0)),         # bias slab
            ],
            out_specs=pl.BlockSpec((tile_mp, pack * se_dim), lambda i: (i, 0)),
        ),
        compiler_params=pltpu.CompilerParams(
            dimension_semantics=("parallel",),
            vmem_limit_bytes=vmem_limit),
        cost_estimate=cost,
    )(x_packed, s_mat, w_blk, b_blk)


def unpack_se_output(out_packed, meta):
    """Trim the packed padded slab back to [N, se_dim].  If this slice does not
    fuse into the consumer (check xprof), prefer consuming the padded slab."""
    return out_packed.reshape(-1, meta["se_dim"])[:meta["n"]]


def hypergraph_se_forward(encodings, gamma, beta, w, b, *,
                          tile_m=32768, out_dtype=jnp.float32,
                          pack=None, pack_cap=None):
    """One-shot convenience wrapper: LayerNorm(encodings) @ w + b, shape
    [N, se_dim].  For repeated forward() calls on the same graph, call
    pack_encodings() once at init time and use hypergraph_se_forward_packed."""
    x_packed, meta = pack_encodings(encodings, w.shape[1],
                                    tile_m=tile_m, pack=pack, pack_cap=pack_cap)
    out_packed = hypergraph_se_forward_packed(x_packed, gamma, beta, w, b, meta,
                                              out_dtype=out_dtype)
    return unpack_se_output(out_packed, meta)


# ----------------------------------------------------------------------------
# __init__-time glue: compute structure encodings from the incidence matrix H
# (mirrors HypergraphStructureEncoding.compute_structure_encodings)
# ----------------------------------------------------------------------------
def _mode(vals):
    # torch.mode: most frequent value; smallest value on ties.
    uv, counts = np.unique(vals, return_counts=True)   # uv sorted ascending
    return uv[np.argmax(counts)]


def compute_structure_encodings(H_dense,
                                statistics_name=("max", "min", "mean", "mode", "var")):
    H = (H_dense > 0).astype(np.float32)                 # zero/one incidence [n_nodes, n_edges]
    n_nodes, _ = H.shape
    node_degree = H.sum(axis=1)                          # [n_nodes]
    edge_degree = H.sum(axis=0)                          # [n_edges]
    node_idx, edge_idx = np.nonzero(H)                   # coalesced order (row-major)
    edge_sizes = edge_degree[edge_idx].astype(np.float32)

    def stat(name, vals):
        if name == "max":
            return float(np.max(vals))
        if name == "min":
            return float(np.min(vals))
        if name == "mean":
            return float(np.mean(vals))
        if name == "mode":
            return float(_mode(vals))
        if name == "var":
            return float(np.var(vals, ddof=1))           # torch.var is unbiased
        raise ValueError(name)

    global_stats = {s: stat(s, edge_sizes) for s in statistics_name}

    F = len(statistics_name) + 1
    enc = np.zeros((n_nodes, F), dtype=np.float32)
    for i in range(int(node_idx.max()) + 1):
        local = edge_sizes[node_idx == i]
        if local.size == 0:
            # TODO(synk): the PyTorch fallback for hyperedge-free nodes indexes with
            # `~empty_idx` on an int tensor (buggy); we guarantee no empty nodes instead.
            continue
        row = [float(node_degree[i])]
        for s in statistics_name:
            if s == "var" and local.size == 1:
                row.append(-global_stats[s])
            else:
                row.append(stat(s, local) - global_stats[s])
        enc[i] = np.asarray(row, dtype=np.float32)
    return enc


# ----------------------------------------------------------------------------
# Pure-JAX reference for validation
# ----------------------------------------------------------------------------
def reference_forward(encodings, gamma, beta, w, b):
    x = jnp.asarray(encodings, jnp.float32)
    mean = jnp.mean(x, axis=-1, keepdims=True)
    var = jnp.mean((x - mean) ** 2, axis=-1, keepdims=True)
    y = (x - mean) / jnp.sqrt(var + LN_EPS) * gamma + beta
    return jnp.dot(y, w, precision=_PRECISION) + b


if __name__ == "__main__":
    # N deliberately not a multiple of the pack/tile to exercise the padding path.
    n_nodes, n_edges, se_dim = 61, 16, 32
    stats = ("max", "min", "mean", "mode", "var")
    F = len(stats) + 1

    key = jax.random.PRNGKey(0)
    k_h, k_g, k_bt, k_w, k_b = jax.random.split(key, 5)

    # Synthetic random hypergraph incidence matrix (each node joins >= 1 edge).
    H = np.asarray(jax.random.bernoulli(k_h, p=0.25, shape=(n_nodes, n_edges)),
                   dtype=np.float32)
    lonely = H.sum(axis=1) == 0
    H[lonely, 0] = 1.0

    encodings = jnp.asarray(compute_structure_encodings(H, stats))        # [N, 6]

    # Non-trivial LayerNorm affine to exercise the gamma/beta folding.
    gamma = 1.0 + 0.1 * jax.random.normal(k_g, (F,), jnp.float32)
    beta = 0.1 * jax.random.normal(k_bt, (F,), jnp.float32)
    bound = 1.0 / np.sqrt(F)
    w = jax.random.uniform(k_w, (F, se_dim), jnp.float32, -bound, bound)
    b = jax.random.uniform(k_b, (se_dim,), jnp.float32, -bound, bound)

    ref = reference_forward(encodings, gamma, beta, w, b)

    # Init-time packing (once per graph) + copy-free packed forward path.
    x_packed, meta = pack_encodings(encodings, se_dim)
    out_packed = jax.block_until_ready(
        hypergraph_se_forward_packed(x_packed, gamma, beta, w, b, meta))
    out = unpack_se_output(out_packed, meta)
    assert out.shape == (n_nodes, se_dim)
    np.testing.assert_allclose(np.asarray(out), np.asarray(ref), rtol=1e-4, atol=1e-4)

    # Convenience one-shot wrapper (pads/packs internally) - module-parity f32.
    out2 = jax.block_until_ready(hypergraph_se_forward(encodings, gamma, beta, w, b))
    np.testing.assert_allclose(np.asarray(out2), np.asarray(ref), rtol=1e-4, atol=1e-4)

    # Recommended bf16-output path (cuts HBM write traffic ~2x) when downstream
    # tolerates it.
    out_bf16 = jax.block_until_ready(
        hypergraph_se_forward(encodings, gamma, beta, w, b, out_dtype=jnp.bfloat16))
    np.testing.assert_allclose(np.asarray(out_bf16.astype(jnp.float32)),
                               np.asarray(ref), rtol=2e-2, atol=2e-2)

    print("KERNEL_OK")
</pallas_src>

<mosaic_0001>
module attributes {stable_mosaic.version = 11 : i64} {
  func.func @se_forward_kernel(%arg0: i32, %arg1: memref<8x96xf32, #tpu.memory_space<vmem>>, %arg2: memref<96x96xf32, #tpu.memory_space<vmem>>, %arg3: memref<96x512xf32, #tpu.memory_space<vmem>>, %arg4: memref<1x512xf32, #tpu.memory_space<vmem>>, %arg5: memref<8x512xf32, #tpu.memory_space<vmem>>) attributes {dimension_semantics = [#tpu.dimension_semantics<parallel>], iteration_bounds = array<i64: 1>, scalar_prefetch = 0 : i64, scratch_operands = 0 : i64, tpu.core_type = #tpu.core_type<tc>, window_params = [{transform_indices = @transform_0, window_bounds = array<i64: 8, 96>}, {pipeline_mode = #tpu.pipeline_mode<synchronous>, transform_indices = @transform_1, window_bounds = array<i64: 96, 96>}, {pipeline_mode = #tpu.pipeline_mode<synchronous>, transform_indices = @transform_2, window_bounds = array<i64: 96, 512>}, {pipeline_mode = #tpu.pipeline_mode<synchronous>, transform_indices = @transform_3, window_bounds = array<i64: 1, 512>}, {transform_indices = @transform_4, window_bounds = array<i64: 8, 512>}]} {
    %c0 = arith.constant 0 : index
    %c0_0 = arith.constant 0 : index
    %0 = vector.load %arg1[%c0, %c0_0] : memref<8x96xf32, #tpu.memory_space<vmem>>, vector<8x96xf32>
    %c0_1 = arith.constant 0 : index
    %c0_2 = arith.constant 0 : index
    %1 = vector.load %arg2[%c0_1, %c0_2] : memref<96x96xf32, #tpu.memory_space<vmem>>, vector<96x96xf32>
    %cst = arith.constant dense<0.000000e+00> : vector<8x96xf32>
    %2 = tpu.matmul %0, %1, %cst {dimension_numbers = #tpu.dot_dimension_numbers<[1], [0], [0], [1], [0, 0, 1, 1], [], []>, precision = #tpu.contract_precision<fp32>} : vector<8x96xf32>, vector<96x96xf32>, vector<8x96xf32> -> vector<8x96xf32>
    %cst_3 = arith.constant 0.166666672 : f32
    %3 = vector.broadcast %cst_3 : f32 to vector<8x96xf32>
    %4 = arith.mulf %2, %3 : vector<8x96xf32>
    %5 = arith.subf %0, %4 : vector<8x96xf32>
    %6 = arith.mulf %5, %5 : vector<8x96xf32>
    %cst_4 = arith.constant dense<0.000000e+00> : vector<8x96xf32>
    %7 = tpu.matmul %6, %1, %cst_4 {dimension_numbers = #tpu.dot_dimension_numbers<[1], [0], [0], [1], [0, 0, 1, 1], [], []>, precision = #tpu.contract_precision<fp32>} : vector<8x96xf32>, vector<96x96xf32>, vector<8x96xf32> -> vector<8x96xf32>
    %cst_5 = arith.constant 0.166666672 : f32
    %8 = vector.broadcast %cst_5 : f32 to vector<8x96xf32>
    %9 = arith.mulf %7, %8 : vector<8x96xf32>
    %cst_6 = arith.constant 9.99999974E-6 : f32
    %10 = vector.broadcast %cst_6 : f32 to vector<8x96xf32>
    %11 = arith.addf %9, %10 : vector<8x96xf32>
    %12 = math.rsqrt %11 : vector<8x96xf32>
    %13 = arith.mulf %5, %12 : vector<8x96xf32>
    %c0_7 = arith.constant 0 : index
    %c0_8 = arith.constant 0 : index
    %14 = vector.load %arg3[%c0_7, %c0_8] : memref<96x512xf32, #tpu.memory_space<vmem>>, vector<96x512xf32>
    %cst_9 = arith.constant dense<0.000000e+00> : vector<8x512xf32>
    %15 = tpu.matmul %13, %14, %cst_9 {dimension_numbers = #tpu.dot_dimension_numbers<[1], [0], [0], [1], [0, 0, 1, 1], [], []>, precision = #tpu.contract_precision<fp32>} : vector<8x96xf32>, vector<96x512xf32>, vector<8x512xf32> -> vector<8x512xf32>
    %c0_10 = arith.constant 0 : index
    %c0_11 = arith.constant 0 : index
    %16 = vector.load %arg4[%c0_10, %c0_11] : memref<1x512xf32, #tpu.memory_space<vmem>>, vector<1x512xf32>
    %17 = vector.broadcast %16 : vector<1x512xf32> to vector<8x512xf32>
    %18 = arith.addf %15, %17 : vector<8x512xf32>
    %c0_12 = arith.constant 0 : index
    %c0_13 = arith.constant 0 : index
    %19 = vector.load %arg5[%c0_12, %c0_13] : memref<8x512xf32, #tpu.memory_space<vmem>>, vector<8x512xf32>
    tpu.vector_store %arg5[%c0_12, %c0_13], %18 {strides = array<i32>} : memref<8x512xf32, #tpu.memory_space<vmem>>, vector<8x512xf32>,
    return
  }
  func.func @transform_0(%arg0: i32) -> (i32, i32) {
    %c0_i32 = arith.constant 0 : i32
    %c0_i32_0 = arith.constant 0 : i32
    return %arg0, %c0_i32 : i32, i32
  }
  func.func @transform_1(%arg0: i32) -> (i32, i32) {
    %c0_i32 = arith.constant 0 : i32
    %c0_i32_0 = arith.constant 0 : i32
    %c0_i32_1 = arith.constant 0 : i32
    return %c0_i32, %c0_i32_0 : i32, i32
  }
  func.func @transform_2(%arg0: i32) -> (i32, i32) {
    %c0_i32 = arith.constant 0 : i32
    %c0_i32_0 = arith.constant 0 : i32
    %c0_i32_1 = arith.constant 0 : i32
    return %c0_i32, %c0_i32_0 : i32, i32
  }
  func.func @transform_3(%arg0: i32) -> (i32, i32) {
    %c0_i32 = arith.constant 0 : i32
    %c0_i32_0 = arith.constant 0 : i32
    %c0_i32_1 = arith.constant 0 : i32
    return %c0_i32, %c0_i32_0 : i32, i32
  }
  func.func @transform_4(%arg0: i32) -> (i32, i32) {
    %c0_i32 = arith.constant 0 : i32
    %c0_i32_0 = arith.constant 0 : i32
    return %arg0, %c0_i32 : i32, i32
  }
}

</mosaic_0001>

<bundles_post_ra>
// kernel: tpu_custom_call.1
= control target key start
LH: loop header
LB: loop body
LE: loop exit
PB: predicated region body
PF: predicated region fallthrough
CT: control target
= control target key end

     0   :  { %9 = vsyncpa [#allocation3], 0  ;;  %s5416_s0 = inlined_call_operand.hbm [shape: f32[8,96], index: 0, kind: input, shape index: {}]   ;;  %s5417_s1 = inlined_call_operand.hbm [shape: f32[96,96], index: 1, kind: input, shape index: {}]   ;;  %s5418_s2 = inlined_call_operand.hbm [shape: f32[96,512], index: 2, kind: input, shape index: {}]   ;;  %s5419_s3 = inlined_call_operand.vmem [shape: f32[1,512], index: 3, kind: input, shape index: {}]   ;;  %s5420_s4 = inlined_call_operand.hbm [shape: f32[8,512], index: 4, kind: output, shape index: {}]  }
   0x1   :  { %10 = vsyncpa [#allocation6], 0 }
   0x2   :  { %11 = vsyncpa [#allocation4], 0  ;;  %s3992_s15 = smov [#allocation5]   ;;  %s3898_s19 = scalar_lea.hbm %s5417_s1, 1536 }
   0x3   :  { %s27_s16 = sshll.u32 %s3992_s15, 4  ;;  %p3899_p0 = scmp.ne.s32.totalorder %s5417_s1, %s3898_s19  ;;  %s28_s16 = int_to_ptr.vmem [resolvable:$true] %s27_s16 }
   0x4   :  { %p3902_p1 = scmp.lt.u32.totalorder %s3898_s19, %s5417_s1 }
   0x6   :  { %p3904_p2 = pnand %p3902_p1, %p3899_p0 }
   0x8   :  { %3907 = shalt.err (!%p3904_p2)
}
   0x9   :  { %s3908_s24 = scalar_lea.vmem %s28_s16, 1536  ;;  %p3913_p4 = scmp.lt.s32.totalorder %s28_s16, %s28_s16 }
   0xa   :  { %p3909_p3 = scmp.ne.s32.totalorder %s28_s16, %s3908_s24  ;;  %p3914_p5 = scmp.lt.s32.totalorder %s3908_s24, %s3908_s24 }
   0xc   :  { %p3915_p6 = por %p3914_p5, %p3913_p4 }
   0xe   :  { %p3916_p7 = pnand %p3915_p6, %p3909_p3 }
  0x10   :  { %3919 = shalt.err (!%p3916_p7)
}
  0x11   :  { %s3993_s25 = smov 128   ;;  %s3994_s26 = smov 8  }
  0x12   :  { %33 = dma.hbm_to_vmem [thread:$0]  %s5417_s1, 1536, %s28_s16, [#allocation6], %s3993_s25, %s3993_s25, %s3994_s26  }
  0x13   :  { %s3995_s29 = smov [#allocation2]   ;;  %s3996_s5 = smov [#allocation7]  }
  0x14   :  { %s18_s30 = sshll.u32 %s3995_s29, 4  ;;  %s39_s6 = sshll.u32 %s3996_s5, 4  ;;  %s19_s30 = int_to_ptr.vmem [resolvable:$true] %s18_s30  ;;  %s40_s6 = int_to_ptr.vmem [resolvable:$true] %s39_s6 }
  0x15   :  { %s3920_s9 = scalar_lea.hbm %s5416_s0, 128 }
  0x16   :  { %p3921_p8 = scmp.ne.s32.totalorder %s5416_s0, %s3920_s9  ;;  %p3924_p9 = scmp.lt.u32.totalorder %s3920_s9, %s5416_s0 }
  0x18   :  { %p3926_p10 = pnand %p3924_p9, %p3921_p8 }
  0x1a   :  { %3929 = shalt.err (!%p3926_p10)
}
  0x1b   :  { %s3930_s1 = scalar_lea.vmem %s19_s30, 128  ;;  %p3935_p12 = scmp.lt.s32.totalorder %s19_s30, %s19_s30 }
  0x1c   :  { %p3931_p11 = scmp.ne.s32.totalorder %s19_s30, %s3930_s1  ;;  %p3936_p13 = scmp.lt.s32.totalorder %s3930_s1, %s3930_s1 }
  0x1e   :  { %p3937_p0 = por %p3936_p13, %p3935_p12 }
  0x20   :  { %p3938_p1 = pnand %p3937_p0, %p3931_p11 }
  0x22   :  { %3941 = shalt.err (!%p3938_p1)
}
  0x23   :  { %21 = dma.hbm_to_vmem [thread:$0]  %s5416_s0, 128, %s19_s30, [#allocation3]  }
  0x24   :  { %s3942_s18 = scalar_lea.hbm %s5418_s2, 6144 }
  0x25   :  { %p3943_p2 = scmp.ne.s32.totalorder %s5418_s2, %s3942_s18  ;;  %p3946_p3 = scmp.lt.u32.totalorder %s3942_s18, %s5418_s2 }
  0x27   :  { %p3948_p4 = pnand %p3946_p3, %p3943_p2 }
  0x29   :  { %3951 = shalt.err (!%p3948_p4)
}
  0x2a   :  { %s3952_s23 = scalar_lea.vmem %s40_s6, 6144  ;;  %p3957_p6 = scmp.lt.s32.totalorder %s40_s6, %s40_s6 }
  0x2b   :  { %p3953_p5 = scmp.ne.s32.totalorder %s40_s6, %s3952_s23  ;;  %p3958_p7 = scmp.lt.s32.totalorder %s3952_s23, %s3952_s23 }
  0x2d   :  { %p3959_p8 = por %p3958_p7, %p3957_p6 }
  0x2f   :  { %p3960_p9 = pnand %p3959_p8, %p3953_p5 }
  0x31   :  { %3963 = shalt.err (!%p3960_p9)
}
  0x32   :  { %s3997_s0 = smov 512   ;;  %s3998_s24 = smov 32  }
  0x33   :  { %45 = dma.hbm_to_vmem [thread:$0]  %s5418_s2, 6144, %s40_s6, [#allocation6], %s3997_s0, %s3997_s0, %s3998_s24  }
  0x34   :  { %3986 = dma.done.wait [#allocation3], 128  }
  0x35   :  { %3987 = vsyncadd [#allocation3], 4294967168 }
  0x36   :  { %3988 = dma.done.wait [#allocation6], 7680  }
  0x37   :  { %3989 = vsyncadd [#allocation6], 4294959616  ;;  %v3999_v0 = vmov 0.0|0.0   ;;  %vm4000_vm0 = vmmov 0   ;;  %v5421_v1 = vmov 0.0   ;;  %v58_v2 = vld [vmem:[#allocation5] sm:$0xff] }
  0x38   :  { %3337 = vmatprep.subr.bf16.mxu0 %v3999_v0  ;;  %3037 = vmatprep.mubr.msk.f32.mxu0 %vm4000_vm0, %v5421_v1  ;;  %v59_v3 = vld [vmem:[#allocation5 + $0x8] sm:$0xff]  ;;  %v60_v4 = vld [vmem:[#allocation5 + $0x10] sm:$0xff]  ;;  %v75_v5 = vand.u32 4294901760, %v58_v2  ;;  %v61_v7 = vld [vmem:[#allocation5 + $0x18] sm:$0xff]  ;;  %vm70_vm1 = vcmask 785408   ;;  %s4002_s28 = smov [#allocation8]  }
  0x39   :  { %3445 = vmatprep.subr.bf16.mxu1 %v3999_v0  ;;  %3199 = vmatprep.mubr.msk.f32.mxu1 %vm4000_vm0, %v5421_v1  ;;  %v78_v6 = vand.u32 4294901760, %v59_v3  ;;  %v81_v8 = vand.u32 4294901760, %v60_v4  ;;  %v84_v9 = vand.u32 4294901760, %v61_v7  ;;  %v62_v10 = vld [vmem:[#allocation5 + $0x20] sm:$0xff]  ;;  %v63_v11 = vld [vmem:[#allocation5 + $0x28] sm:$0xff]  ;;  %v4072_v13 = vld [vmem:[#allocation2] sm:$0xff] }
  0x3a   :  { %v87_v15 = vand.u32 4294901760, %v62_v10  ;;  %v90_v16 = vand.u32 4294901760, %v63_v11  ;;  %v72_v17 = vsel %vm70_vm1, %v4072_v13, 0  ;;  %v64_v18 = vld [vmem:[#allocation5 + $0x30] sm:$0xff]  ;;  %v65_v19 = vld [vmem:[#allocation5 + $0x38] sm:$0xff]  ;;  %v4084_v21 = vsub.f32 %v58_v2, %v75_v5  ;;  %v66_v26 = vld [vmem:[#allocation5 + $0x40] sm:$0xff] }
  0x3b   :  { %v4070_v12 = vpack.c.bf16 %v78_v6, %v75_v5  ;;  %v4075_v14 = vpack.c.bf16 %v84_v9, %v81_v8  ;;  %v4082_v20 = vand.u32 4294901760, %v72_v17  ;;  %v4086_v22 = vsub.f32 %v59_v3, %v78_v6  ;;  %v67_v27 = vld [vmem:[#allocation5 + $0x48] sm:$0xff]  ;;  %v68_v28 = vld [vmem:[#allocation5 + $0x50] sm:$0xff]  ;;  %v69_v30 = vld [vmem:[#allocation5 + $0x58] sm:$0xff]  ;;  %s2847_s29 = sshll.u32 %s4002_s28, 4  ;;  %s2848_s29 = int_to_ptr.vmem [resolvable:$true] %s2847_s29 }
  0x3c   :  { %v4089_v23 = vpack.c.bf16 %v90_v16, %v87_v15  ;;  %v93_v24 = vand.u32 4294901760, %v64_v18  ;;  %v96_v25 = vand.u32 4294901760, %v65_v19  ;;  %v4093_v29 = vsub.f32 %v60_v4, %v81_v8  ;;  %p3969_p11 = scmp.lt.s32.totalorder %s2848_s29, %s2848_s29 }
  0x3d   :  { %3339 = vmatpush3.bf16.msra.mxu0 %v4070_v12  ;;  %3447 = vmatpush3.bf16.msra.mxu1 %v4070_v12  ;;  %v4097_v31 = vsub.f32 %v72_v17, %v4082_v20  ;;  %v164_v32 = vand.u32 4294901760, %v4084_v21  ;;  %v4100_v33 = vsub.f32 %v61_v7, %v84_v9  ;;  %v171_v34 = vand.u32 4294901760, %v4086_v22 }
  0x3e   :  { %3340 = vmatprep.subr.bf16.mxu0 %v3999_v0  ;;  %3448 = vmatprep.subr.bf16.mxu1 %v3999_v0  ;;  %v4104_v35 = vpack.c.bf16 %v96_v25, %v93_v24  ;;  %v99_v36 = vand.u32 4294901760, %v66_v26  ;;  %v102_v37 = vand.u32 4294901760, %v67_v27  ;;  %v105_v38 = vand.u32 4294901760, %v68_v28 }
  0x3f   :  { %v108_v39 = vand.u32 4294901760, %v69_v30  ;;  %v178_v40 = vand.u32 4294901760, %v4093_v29  ;;  %v4109_v41 = vsub.f32 %v62_v10, %v87_v15  ;;  %v4111_v42 = vsub.f32 %v63_v11, %v90_v16 }
  0x40   :  { %v153_v43 = vand.u32 4294901760, %v4097_v31  ;;  %v165_v44 = vsub.f32 %v4084_v21, %v164_v32  ;;  %v185_v45 = vand.u32 4294901760, %v4100_v33  ;;  %v4117_v46 = vsub.f32 %v64_v18, %v93_v24 }
  0x41   :  { %3342 = vmatpush3.bf16.msra.mxu0 %v4075_v14  ;;  %3450 = vmatpush3.bf16.msra.mxu1 %v4075_v14  ;;  %v172_v47 = vsub.f32 %v4086_v22, %v171_v34  ;;  %v4120_v48 = vsub.f32 %v65_v19, %v96_v25  ;;  %v4122_v49 = vsub.f32 %v66_v26, %v99_v36  ;;  %v192_v56 = vand.u32 4294901760, %v4109_v41 }
  0x42   :  { %3343 = vmatprep.subr.bf16.mxu0 %v3999_v0  ;;  %3451 = vmatprep.subr.bf16.mxu1 %v3999_v0  ;;  %v4124_v50 = vsub.f32 %v67_v27, %v102_v37  ;;  %v4127_v51 = vpack.c.bf16 %v102_v37, %v99_v36  ;;  %v4129_v52 = vsub.f32 %v68_v28, %v105_v38  ;;  %v199_v57 = vand.u32 4294901760, %v4111_v42 }
  0x43   :  { %v4131_v53 = vsub.f32 %v69_v30, %v108_v39  ;;  %v4135_v54 = vpack.c.bf16 %v108_v39, %v105_v38  ;;  %v179_v55 = vsub.f32 %v4093_v29, %v178_v40  ;;  %v154_v58 = vsub.f32 %v4097_v31, %v153_v43 }
  0x44   :  { %v166_v59 = vand.u32 4294901760, %v165_v44  ;;  %v186_v60 = vsub.f32 %v4100_v33, %v185_v45  ;;  %v206_v61 = vand.u32 4294901760, %v4117_v46  ;;  %v173_v62 = vand.u32 4294901760, %v172_v47 }
  0x45   :  { %3345 = vmatpush3.bf16.msra.mxu0 %v4089_v23  ;;  %3453 = vmatpush3.bf16.msra.mxu1 %v4089_v23  ;;  %v213_v63 = vand.u32 4294901760, %v4120_v48  ;;  %v220_v2 = vand.u32 4294901760, %v4122_v49  ;;  %v227_v3 = vand.u32 4294901760, %v4124_v50  ;;  %v234_v4 = vand.u32 4294901760, %v4129_v52 }
  0x46   :  { %3346 = vmatprep.subr.bf16.mxu0 %v3999_v0  ;;  %3454 = vmatprep.subr.bf16.mxu1 %v3999_v0  ;;  %v241_v5 = vand.u32 4294901760, %v4131_v53  ;;  %v4152_v6 = vpack.c.bf16 %v171_v34, %v164_v32  ;;  %v4154_v7 = vpack.c.bf16 %v185_v45, %v178_v40  ;;  %v4158_v8 = vpack.c.bf16 %v199_v57, %v192_v56 }
  0x47   :  { %v4160_v9 = vpack.c.bf16 %v213_v63, %v206_v61  ;;  %v4163_v10 = vpack.c.bf16 %v227_v3, %v220_v2  ;;  %v155_v15 = vand.u32 4294901760, %v154_v58  ;;  %v193_v16 = vsub.f32 %v4109_v41, %v192_v56 }
  0x48   :  { %v4165_v11 = vpack.c.bf16 %v241_v5, %v234_v4  ;;  %v4169_v17 = vpack.c.bf16 %v173_v62, %v166_v59  ;;  %v180_v18 = vand.u32 4294901760, %v179_v55  ;;  %v187_v19 = vand.u32 4294901760, %v186_v60 }
  0x49   :  { %3348 = vmatpush3.bf16.msra.mxu0 %v4104_v35  ;;  %3456 = vmatpush3.bf16.msra.mxu1 %v4104_v35  ;;  %v200_v24 = vsub.f32 %v4111_v42, %v199_v57  ;;  %v194_v25 = vand.u32 4294901760, %v193_v16  ;;  %v207_v28 = vsub.f32 %v4117_v46, %v206_v61  ;;  %v214_v30 = vsub.f32 %v4120_v48, %v213_v63  ;;  %v4381_v61 = vld [vmem:[#allocation7 + $0x38] sm:$0xff] }
  0x4a   :  { %3349 = vmatprep.subr.bf16.mxu0 %v3999_v0  ;;  %3457 = vmatprep.subr.bf16.mxu1 %v3999_v0  ;;  %v4176_v26 = vpack.c.bf16 %v187_v19, %v180_v18  ;;  %v221_v32 = vsub.f32 %v4122_v49, %v220_v2  ;;  %v228_v38 = vsub.f32 %v4124_v50, %v227_v3  ;;  %v5445_v62 = vand.u32 4294901760, %v4381_v61  ;;  %v4391_v3 = vld [vmem:[#allocation7 + $0x10] sm:$0xff]  ;;  %v4430_v19 = vld [vmem:[#allocation7 + $0x78] sm:$0xff] }
  0x4b   :  { %v201_v27 = vand.u32 4294901760, %v200_v24  ;;  %v208_v36 = vand.u32 4294901760, %v207_v28  ;;  %v215_v37 = vand.u32 4294901760, %v214_v30  ;;  %v235_v45 = vsub.f32 %v4129_v52, %v234_v4  ;;  %v4393_v4 = vld [vmem:[#allocation7 + $0x30] sm:$0xff] }
  0x4c   :  { %v222_v39 = vand.u32 4294901760, %v221_v32  ;;  %v229_v44 = vand.u32 4294901760, %v228_v38  ;;  %v242_v47 = vsub.f32 %v4131_v53, %v241_v5  ;;  %v4206_v59 = vpack.c.bf16 %v4086_v22, %v4084_v21  ;;  %v4442_v32 = vld [vmem:[#allocation7 + $0x50] sm:$0xff] }
  0x4d   :  { %3351 = vmatpush3.bf16.msra.mxu0 %v4127_v51  ;;  %3459 = vmatpush3.bf16.msra.mxu1 %v4127_v51  ;;  %v4185_v34 = vpack.c.bf16 %v201_v27, %v194_v25  ;;  %v4190_v40 = vpack.c.bf16 %v215_v37, %v208_v36  ;;  %v236_v56 = vand.u32 4294901760, %v235_v45  ;;  %v4213_v60 = vpack.c.bf16 %v4100_v33, %v4093_v29  ;;  %v4433_v25 = vld [vmem:[#allocation7 + $0x40] sm:$0xff]  ;;  %v4469_v45 = vld [vmem:[#allocation7 + $0xa8] sm:$0xff] }
  0x4e   :  { %3352 = vmatprep.subr.bf16.mxu0 %v3999_v0  ;;  %3460 = vmatprep.subr.bf16.mxu1 %v3999_v0  ;;  %v4196_v55 = vpack.c.bf16 %v229_v44, %v222_v39  ;;  %v243_v57 = vand.u32 4294901760, %v242_v47  ;;  %v4221_v21 = vpack.c.bf16 %v4111_v42, %v4109_v41  ;;  %v4227_v22 = vpack.c.bf16 %v4120_v48, %v4117_v46  ;;  %v4467_v44 = vld [vmem:[#allocation7 + $0x88] sm:$0xff]  ;;  %v4471_v47 = vld [vmem:[#allocation7 + $0x98] sm:$0xff] }
  0x4f   :  { %v4233_v29 = vpack.c.bf16 %v4124_v50, %v4122_v49  ;;  %v4239_v33 = vpack.c.bf16 %v4131_v53, %v4129_v52  ;;  %v5435_v27 = vand.u32 4294901760, %v4430_v19  ;;  %v5434_v28 = vand.u32 4294901760, %v4433_v25 }
  0x50   :  { %v4200_v58 = vpack.c.bf16 %v243_v57, %v236_v56  ;;  %v5432_v37 = vand.u32 4294901760, %v4442_v32  ;;  %v5428_v56 = vand.u32 4294901760, %v4467_v44  ;;  %v5427_v57 = vand.u32 4294901760, %v4469_v45 }
  0x51   :  { %3354 = vmatpush3.bf16.msra.mxu0 %v4135_v54  ;;  %3462 = vmatpush3.bf16.msra.mxu1 %v4135_v54 }
  0x52   :  { %3355 = vmatprep.subr.bf16.mxu0 %v3999_v0  ;;  %3463 = vmatprep.subr.bf16.mxu1 %v3999_v0 }
  0x54   :  { %3038 = vmatmul.mubr.f32.vlgmr.msra.gmra.mrb[0].mxu0 %v155_v15  ;;  %v4419_v15 = vld [vmem:[#allocation7 + $0x58] sm:$0xff] }
  0x55   :  { %3357 = vmatpush3.bf16.msra.mxu0 %v4169_v17  ;;  %3064 = vmatprep.mubr.msk.f32.mxu0 %vm4000_vm0, %v5421_v1  ;;  %v5436_v24 = vand.u32 4294901760, %v4419_v15 }
  0x56   :  { %3358 = vmatprep.subr.bf16.mxu0 %v3999_v0 }
  0x57   :  { %v4459_v39 = vpack.c.bf16 %v5435_v27, %v5436_v24 }
  0x59   :  { %3360 = vmatpush3.bf16.msra.mxu0 %v4176_v26  ;;  %5567 = vst [vmem:[#allocation18_spill] sm:$0xff] %v4459_v39 }
  0x5a   :  { %3361 = vmatprep.subr.bf16.mxu0 %v3999_v0 }
  0x5d   :  { %3363 = vmatpush3.bf16.msra.mxu0 %v4185_v34 }
  0x5e   :  { %3364 = vmatprep.subr.bf16.mxu0 %v3999_v0 }
  0x61   :  { %3366 = vmatpush3.bf16.msra.mxu0 %v4190_v40 }
  0x62   :  { %3367 = vmatprep.subr.bf16.mxu0 %v3999_v0 }
  0x65   :  { %3369 = vmatpush3.bf16.msra.mxu0 %v4196_v55 }
  0x66   :  { %3370 = vmatprep.subr.bf16.mxu0 %v3999_v0 }
  0x69   :  { %3372 = vmatpush3.bf16.msra.mxu0 %v4200_v58 }
  0x6a   :  { %3373 = vmatprep.subr.bf16.mxu0 %v3999_v0 }
  0x6c   :  { %3065 = vmatmul.mubr.f32.vlgmr.msra.gmra.mrb[0].mxu0 %v4082_v20 }
  0x6d   :  { %3375 = vmatpush3.bf16.msra.mxu0 %v4206_v59  ;;  %3091 = vmatprep.mubr.msk.f32.mxu0 %vm4000_vm0, %v5421_v1 }
  0x6e   :  { %3376 = vmatprep.subr.bf16.mxu0 %v3999_v0 }
  0x71   :  { %3378 = vmatpush3.bf16.msra.mxu0 %v4213_v60 }
  0x72   :  { %3379 = vmatprep.subr.bf16.mxu0 %v3999_v0 }
  0x75   :  { %3381 = vmatpush3.bf16.msra.mxu0 %v4221_v21 }
  0x76   :  { %3382 = vmatprep.subr.bf16.mxu0 %v3999_v0 }
  0x79   :  { %3384 = vmatpush3.bf16.msra.mxu0 %v4227_v22 }
  0x7a   :  { %3385 = vmatprep.subr.bf16.mxu0 %v3999_v0 }
  0x7d   :  { %3387 = vmatpush3.bf16.msra.mxu0 %v4233_v29 }
  0x7e   :  { %3388 = vmatprep.subr.bf16.mxu0 %v3999_v0 }
  0x81   :  { %3390 = vmatpush3.bf16.msra.mxu0 %v4239_v33 }
  0x82   :  { %3391 = vmatprep.subr.bf16.mxu0 %v3999_v0 }
  0x84   :  { %3092 = vmatmul.mubr.f32.vlgmr.msra.gmra.mrb[0].mxu0 %v4097_v31 }
  0x85   :  { %3393 = vmatpush3.bf16.msra.mxu0 %v4070_v12  ;;  %3118 = vmatprep.mubr.msk.f32.mxu0 %vm4000_vm0, %v5421_v1 }
  0x86   :  { %3394 = vmatprep.subr.bf16.mxu0 %v3999_v0 }
  0x89   :  { %3396 = vmatpush3.bf16.msra.mxu0 %v4075_v14 }
  0x8a   :  { %3397 = vmatprep.subr.bf16.mxu0 %v3999_v0 }
  0x8d   :  { %3399 = vmatpush3.bf16.msra.mxu0 %v4089_v23 }
  0x8e   :  { %3400 = vmatprep.subr.bf16.mxu0 %v3999_v0 }
  0x91   :  { %3402 = vmatpush3.bf16.msra.mxu0 %v4104_v35 }
  0x92   :  { %3403 = vmatprep.subr.bf16.mxu0 %v3999_v0 }
  0x95   :  { %3405 = vmatpush3.bf16.msra.mxu0 %v4127_v51 }
  0x96   :  { %3406 = vmatprep.subr.bf16.mxu0 %v3999_v0 }
  0x99   :  { %3408 = vmatpush3.bf16.msra.mxu0 %v4135_v54 }
  0x9a   :  { %3409 = vmatprep.subr.bf16.mxu0 %v3999_v0 }
  0x9c   :  { %3119 = vmatmul.mubr.f32.vlgmr.msra.gmra.mrb[0].mxu0 %v153_v43 }
  0x9d   :  { %3411 = vmatpush3.bf16.msra.mxu0 %v4152_v6  ;;  %3145 = vmatprep.mubr.msk.f32.mxu0 %vm4000_vm0, %v5421_v1 }
  0x9e   :  { %3412 = vmatprep.subr.bf16.mxu0 %v3999_v0 }
  0xa1   :  { %3414 = vmatpush3.bf16.msra.mxu0 %v4154_v7 }
  0xa2   :  { %3415 = vmatprep.subr.bf16.mxu0 %v3999_v0 }
  0xa5   :  { %3417 = vmatpush3.bf16.msra.mxu0 %v4158_v8 }
  0xa6   :  { %3418 = vmatprep.subr.bf16.mxu0 %v3999_v0 }
  0xa9   :  { %3420 = vmatpush3.bf16.msra.mxu0 %v4160_v9 }
  0xaa   :  { %3421 = vmatprep.subr.bf16.mxu0 %v3999_v0 }
  0xad   :  { %3423 = vmatpush3.bf16.msra.mxu0 %v4163_v10 }
  0xae   :  { %3424 = vmatprep.subr.bf16.mxu0 %v3999_v0 }
  0xb1   :  { %3426 = vmatpush3.bf16.msra.mxu0 %v4165_v11 }
  0xb2   :  { %3427 = vmatprep.subr.bf16.mxu0 %v3999_v0 }
  0xb4   :  { %3146 = vmatmul.mubr.f32.vlgmr.msra.gmra.mrb[0].mxu0 %v4082_v20 }
  0xb5   :  { %3429 = vmatpush3.bf16.msra.mxu0 %v4070_v12  ;;  %3172 = vmatprep.mubr.msk.f32.mxu0 %vm4000_vm0, %v5421_v1 }
  0xb6   :  { %3430 = vmatprep.subr.bf16.mxu0 %v3999_v0 }
  0xb9   :  { %3432 = vmatpush3.bf16.msra.mxu0 %v4075_v14 }
  0xba   :  { %3433 = vmatprep.subr.bf16.mxu0 %v3999_v0 }
  0xbd   :  { %3435 = vmatpush3.bf16.msra.mxu0 %v4089_v23 }
  0xbe   :  { %3436 = vmatprep.subr.bf16.mxu0 %v3999_v0 }
  0xc1   :  { %3438 = vmatpush3.bf16.msra.mxu0 %v4104_v35 }
  0xc2   :  { %3439 = vmatprep.subr.bf16.mxu0 %v3999_v0 }
  0xc5   :  { %3441 = vmatpush3.bf16.msra.mxu0 %v4127_v51 }
  0xc6   :  { %3442 = vmatprep.subr.bf16.mxu0 %v3999_v0 }
  0xc9   :  { %3444 = vmatpush3.bf16.msra.mxu0 %v4135_v54 }
  0xcc   :  { %3173 = vmatmul.mubr.f32.vlgmr.msra.gmra.mrb[0].mxu0 %v4082_v20 }
  0xcd   :  { %1423 = vmatprep.mubr.f32.mxu0 %v5421_v1 }
 0x19f   :  { %v659_v31 = vpop.f32.mrb[0].mxu0 }
 0x1a0   :  { %v663_v41 = vmul.f32 0.16666667, %v659_v31  ;;  %v3174_v42 = vpop.f32.mrb[1].mxu0  ;;  %v4494_v31 = vld [vmem:[#allocation7 + $0x90] sm:$0xff] }
 0x1a1   :  { %v4503_v42 = vpack.c.bf16 %v5427_v57, %v5428_v56  ;;  %v4537_v57 = vld [vmem:[#allocation7 + $0xc0] sm:$0xff] }
 0x1a2   :  { %v4292_v43 = vsub.f32 %v4072_v13, %v663_v41  ;;  %v4375_v13 = vld [vmem:[#allocation7 + $0x28] sm:$0xff]  ;;  %v4496_v41 = vld [vmem:[#allocation7 + $0xb0] sm:$0xff]  ;;  %v4539_v56 = vld [vmem:[#allocation7 + $0xe0] sm:$0xff] }
 0x1a3   :  { %5570 = vst [vmem:[#allocation21_spill] sm:$0xff] %v4503_v42 }
 0x1a4   :  { %5561 = vst [vmem:[#allocation12_spill] sm:$0xff] %v4292_v43  ;;  %v665_v46 = vmul.f32 %v4292_v43, %v4292_v43 }
 0x1a6   :  { %v667_v48 = vsel %vm70_vm1, %v665_v46, 0  ;;  %v5431_v46 = vand.u32 4294901760, %v4494_v31 }
 0x1a7   :  { %v4297_v49 = vand.u32 4294901760, %v667_v48 }
 0x1a9   :  { %v747_v50 = vsub.f32 %v667_v48, %v4297_v49  ;;  %v5430_v48 = vand.u32 4294901760, %v4496_v41 }
 0x1ab   :  { %v748_v52 = vand.u32 4294901760, %v747_v50 }
 0x1ad   :  { %v749_v53 = vsub.f32 %v747_v50, %v748_v52 }
 0x1af   :  { %v750_v20 = vand.u32 4294901760, %v749_v53  ;;  %v4521_v53 = vld [vmem:[#allocation7 + $0xe8] sm:$0xff] }
 0x1b1   :  { %3200 = vmatmul.mubr.f32.vlgmr.msra.gmra.mrb[0].mxu1 %v750_v20  ;;  %v4523_v20 = vld [vmem:[#allocation7 + $0xd8] sm:$0xff] }
 0x1b2   :  { %3465 = vmatpush3.bf16.msra.mxu1 %v4169_v17  ;;  %3226 = vmatprep.mubr.msk.f32.mxu1 %vm4000_vm0, %v5421_v1 }
 0x1b3   :  { %3466 = vmatprep.subr.bf16.mxu1 %v3999_v0 }
 0x1b6   :  { %3468 = vmatpush3.bf16.msra.mxu1 %v4176_v26  ;;  %v4435_v26 = vld [vmem:[#allocation7 + $0x60] sm:$0xff] }
 0x1b7   :  { %3469 = vmatprep.subr.bf16.mxu1 %v3999_v0  ;;  %v5433_v30 = vand.u32 4294901760, %v4435_v26 }
 0x1ba   :  { %3471 = vmatpush3.bf16.msra.mxu1 %v4185_v34  ;;  %v4444_v34 = vld [vmem:[#allocation7 + $0x70] sm:$0xff] }
 0x1bb   :  { %3472 = vmatprep.subr.bf16.mxu1 %v3999_v0  ;;  %v5429_v38 = vand.u32 4294901760, %v4444_v34 }
 0x1be   :  { %3474 = vmatpush3.bf16.msra.mxu1 %v4190_v40  ;;  %v4465_v40 = vpack.c.bf16 %v5433_v30, %v5434_v28  ;;  %v4548_v30 = vld [vmem:[#allocation7 + $0xf0] sm:$0xff] }
 0x1bf   :  { %3475 = vmatprep.subr.bf16.mxu1 %v3999_v0  ;;  %v2116_v24 = vand.u32 4294901760, %v4548_v30 }
 0x1c0   :  { %5568 = vst [vmem:[#allocation19_spill] sm:$0xff] %v4465_v40 }
 0x1c2   :  { %3477 = vmatpush3.bf16.msra.mxu1 %v4196_v55  ;;  %v4478_v55 = vpack.c.bf16 %v5429_v38, %v5432_v37  ;;  %v4546_v37 = vld [vmem:[#allocation7 + $0xd0] sm:$0xff] }
 0x1c3   :  { %3478 = vmatprep.subr.bf16.mxu1 %v3999_v0  ;;  %v2112_v27 = vand.u32 4294901760, %v4546_v37 }
 0x1c4   :  { %5569 = vst [vmem:[#allocation20_spill] sm:$0xff] %v4478_v55 }
 0x1c6   :  { %3480 = vmatpush3.bf16.msra.mxu1 %v4200_v58  ;;  %v4482_v58 = vld [vmem:[#allocation7 + $0xb8] sm:$0xff] }
 0x1c7   :  { %3481 = vmatprep.subr.bf16.mxu1 %v3999_v0 }
 0x1c9   :  { %3227 = vmatmul.mubr.f32.vlgmr.msra.gmra.mrb[0].mxu1 %v4297_v49 }
 0x1ca   :  { %3483 = vmatpush3.bf16.msra.mxu1 %v4206_v59  ;;  %3253 = vmatprep.mubr.msk.f32.mxu1 %vm4000_vm0, %v5421_v1  ;;  %v5424_v59 = vand.u32 4294901760, %v4471_v47 }
 0x1cb   :  { %3484 = vmatprep.subr.bf16.mxu1 %v3999_v0 }
 0x1ce   :  { %3486 = vmatpush3.bf16.msra.mxu1 %v4213_v60  ;;  %v4485_v60 = vld [vmem:[#allocation7 + $0x80] sm:$0xff] }
 0x1cf   :  { %3487 = vmatprep.subr.bf16.mxu1 %v3999_v0 }
 0x1d2   :  { %3489 = vmatpush3.bf16.msra.mxu1 %v4221_v21  ;;  %v4487_v21 = vld [vmem:[#allocation7 + $0xa0] sm:$0xff] }
 0x1d3   :  { %3490 = vmatprep.subr.bf16.mxu1 %v3999_v0 }
 0x1d6   :  { %3492 = vmatpush3.bf16.msra.mxu1 %v4227_v22  ;;  %v5423_v22 = vand.u32 4294901760, %v4482_v58 }
 0x1d7   :  { %3493 = vmatprep.subr.bf16.mxu1 %v3999_v0 }
 0x1da   :  { %3495 = vmatpush3.bf16.msra.mxu1 %v4233_v29  ;;  %v5426_v29 = vand.u32 4294901760, %v4485_v60 }
 0x1db   :  { %3496 = vmatprep.subr.bf16.mxu1 %v3999_v0 }
 0x1de   :  { %3498 = vmatpush3.bf16.msra.mxu1 %v4239_v33  ;;  %v5425_v33 = vand.u32 4294901760, %v4487_v21 }
 0x1df   :  { %3499 = vmatprep.subr.bf16.mxu1 %v3999_v0 }
 0x1e1   :  { %3254 = vmatmul.mubr.f32.vlgmr.msra.gmra.mrb[0].mxu1 %v747_v50  ;;  %v4517_v50 = vpack.c.bf16 %v5425_v33, %v5426_v29  ;;  %v4534_v33 = vld [vmem:[#allocation7 + $0xf8] sm:$0xff]  ;;  %v5449_v29 = vand.u32 4294901760, %v4523_v20 }
 0x1e2   :  { %3501 = vmatpush3.bf16.msra.mxu1 %v4070_v12  ;;  %3280 = vmatprep.mubr.msk.f32.mxu1 %vm4000_vm0, %v5421_v1  ;;  %v5448_v38 = vand.u32 4294901760, %v4534_v33 }
 0x1e3   :  { %3502 = vmatprep.subr.bf16.mxu1 %v3999_v0  ;;  %5572 = vst [vmem:[#allocation23_spill] sm:$0xff] %v4517_v50 }
 0x1e6   :  { %3504 = vmatpush3.bf16.msra.mxu1 %v4075_v14 }
 0x1e7   :  { %3505 = vmatprep.subr.bf16.mxu1 %v3999_v0 }
 0x1ea   :  { %3507 = vmatpush3.bf16.msra.mxu1 %v4089_v23 }
 0x1eb   :  { %3508 = vmatprep.subr.bf16.mxu1 %v3999_v0 }
 0x1ee   :  { %3510 = vmatpush3.bf16.msra.mxu1 %v4104_v35 }
 0x1ef   :  { %3511 = vmatprep.subr.bf16.mxu1 %v3999_v0 }
 0x1f2   :  { %3513 = vmatpush3.bf16.msra.mxu1 %v4127_v51 }
 0x1f3   :  { %3514 = vmatprep.subr.bf16.mxu1 %v3999_v0 }
 0x1f6   :  { %3516 = vmatpush3.bf16.msra.mxu1 %v4135_v54 }
 0x1f7   :  { %3517 = vmatprep.subr.bf16.mxu1 %v3999_v0 }
 0x1f9   :  { %3281 = vmatmul.mubr.f32.vlgmr.msra.gmra.mrb[0].mxu1 %v748_v52  ;;  %v4519_v52 = vld [vmem:[#allocation7 + $0xc8] sm:$0xff] }
 0x1fa   :  { %3519 = vmatpush3.bf16.msra.mxu1 %v4152_v6  ;;  %3307 = vmatprep.mubr.msk.f32.mxu1 %vm4000_vm0, %v5421_v1  ;;  %v5440_v6 = vand.u32 4294901760, %v4391_v3 }
 0x1fb   :  { %3520 = vmatprep.subr.bf16.mxu1 %v3999_v0 }
 0x1fe   :  { %3522 = vmatpush3.bf16.msra.mxu1 %v4154_v7  ;;  %v5439_v7 = vand.u32 4294901760, %v4393_v4 }
 0x1ff   :  { %3523 = vmatprep.subr.bf16.mxu1 %v3999_v0 }
 0x200   :  { %v4426_v16 = vpack.c.bf16 %v5439_v7, %v5440_v6  ;;  %v1295_v7 = vld [vmem:[#allocation7 + $0x108] sm:$0xff] }
 0x201   :  { %v1299_v6 = vld [vmem:[#allocation7 + $0x128] sm:$0xff] }
 0x202   :  { %3525 = vmatpush3.bf16.msra.mxu1 %v4158_v8  ;;  %5565 = vst [vmem:[#allocation16_spill] sm:$0xff] %v4426_v16 }
 0x203   :  { %3526 = vmatprep.subr.bf16.mxu1 %v3999_v0 }
 0x206   :  { %3528 = vmatpush3.bf16.msra.mxu1 %v4160_v9 }
 0x207   :  { %3529 = vmatprep.subr.bf16.mxu1 %v3999_v0 }
 0x20a   :  { %3531 = vmatpush3.bf16.msra.mxu1 %v4163_v10  ;;  %v4415_v10 = vld [vmem:[#allocation7 + $0x48] sm:$0xff] }
 0x20b   :  { %3532 = vmatprep.subr.bf16.mxu1 %v3999_v0  ;;  %v5438_v17 = vand.u32 4294901760, %v4415_v10 }
 0x20e   :  { %3534 = vmatpush3.bf16.msra.mxu1 %v4165_v11  ;;  %v4417_v11 = vld [vmem:[#allocation7 + $0x68] sm:$0xff] }
 0x20f   :  { %3535 = vmatprep.subr.bf16.mxu1 %v3999_v0  ;;  %v5437_v18 = vand.u32 4294901760, %v4417_v11 }
 0x211   :  { %3308 = vmatmul.mubr.f32.vlgmr.msra.gmra.mrb[0].mxu1 %v4297_v49  ;;  %v4451_v36 = vpack.c.bf16 %v5437_v18, %v5438_v17  ;;  %v4563_v18 = vpack.c.bf16 %v5448_v38, %v5449_v29  ;;  %v1298_v38 = vld [vmem:[#allocation7 + $0x120] sm:$0xff] }
 0x212   :  { %3537 = vmatpush3.bf16.msra.mxu1 %v4070_v12  ;;  %3334 = vmatprep.mubr.msk.f32.mxu1 %vm4000_vm0, %v5421_v1  ;;  %v4373_v12 = vld [vmem:[#allocation7 + $0x8] sm:$0xff] }
 0x213   :  { %3538 = vmatprep.subr.bf16.mxu1 %v3999_v0  ;;  %5566 = vst [vmem:[#allocation17_spill] sm:$0xff] %v4451_v36  ;;  %5575 = vst [vmem:[#allocation26_spill] sm:$0xff] %v4563_v18 }
 0x216   :  { %3540 = vmatpush3.bf16.msra.mxu1 %v4075_v14  ;;  %v4377_v14 = vld [vmem:[#allocation7 + $0x18] sm:$0xff] }
 0x217   :  { %3541 = vmatprep.subr.bf16.mxu1 %v3999_v0 }
 0x21a   :  { %3543 = vmatpush3.bf16.msra.mxu1 %v4089_v23  ;;  %v5452_v23 = vand.u32 4294901760, %v4373_v12 }
 0x21b   :  { %3544 = vmatprep.subr.bf16.mxu1 %v3999_v0 }
 0x21e   :  { %3546 = vmatpush3.bf16.msra.mxu1 %v4104_v35  ;;  %v5447_v35 = vand.u32 4294901760, %v4375_v13 }
 0x21f   :  { %3547 = vmatprep.subr.bf16.mxu1 %v3999_v0 }
 0x220   :  { %v4399_v5 = vpack.c.bf16 %v5447_v35, %v5452_v23  ;;  %v1294_v35 = vld [vmem:[#allocation7 + $0x100] sm:$0xff]  ;;  %v1296_v23 = vld [vmem:[#allocation7 + $0x110] sm:$0xff] }
 0x222   :  { %3549 = vmatpush3.bf16.msra.mxu1 %v4127_v51  ;;  %v4384_v51 = vld [vmem:[#allocation7] sm:$0xff]  ;;  %5562 = vst [vmem:[#allocation13_spill] sm:$0xff] %v4399_v5  ;;  %3554 = vmatprep.subr.bf16.mxu0 %v4399_v5 }
 0x223   :  { %3550 = vmatprep.subr.bf16.mxu1 %v3999_v0  ;;  %v5446_v0 = vand.u32 4294901760, %v4377_v14  ;;  %v5444_v63 = vand.u32 4294901760, %v4384_v51 }
 0x225   :  { %v4407_v8 = vpack.c.bf16 %v5445_v62, %v5446_v0  ;;  %v1301_v62 = vld [vmem:[#allocation7 + $0x138] sm:$0xff] }
 0x226   :  { %3552 = vmatpush3.bf16.msra.mxu1 %v4135_v54  ;;  %v4386_v54 = vld [vmem:[#allocation7 + $0x20] sm:$0xff]  ;;  %v2122_v29 = vand.u32 4294901760, %v1301_v62 }
 0x227   :  { %v5443_v2 = vand.u32 4294901760, %v4386_v54  ;;  %5563 = vst [vmem:[#allocation14_spill] sm:$0xff] %v4407_v8  ;;  %3698 = vmatprep.subr.bf16.mxu1 %v4407_v8  ;;  %v1302_v8 = vld [vmem:[#allocation7 + $0x140] sm:$0xff] }
 0x229   :  { %3335 = vmatmul.mubr.f32.vlgmr.msra.gmra.mrb[0].mxu1 %v4297_v49  ;;  %v4413_v9 = vpack.c.bf16 %v5443_v2, %v5444_v63  ;;  %v4511_v49 = vpack.c.bf16 %v5423_v22, %v5424_v59  ;;  %v5442_v22 = vand.u32 4294901760, %v4519_v52  ;;  %v5441_v59 = vand.u32 4294901760, %v4521_v53 }
 0x22a   :  { %2174 = vmatprep.mubr.f32.mxu1 %v5421_v1  ;;  %3700 = vmatpush1.bf16.msra.mxu1 %v4426_v16  ;;  %v4530_v1 = vpack.c.bf16 %v5430_v48, %v5431_v46  ;;  %v5451_v48 = vand.u32 4294901760, %v4537_v57  ;;  %v5450_v46 = vand.u32 4294901760, %v4539_v56  ;;  %v1367_v2 = vand.u32 4294901760, %v1295_v7 }
 0x22b   :  { %5564 = vst [vmem:[#allocation15_spill] sm:$0xff] %v4413_v9  ;;  %3556 = vmatpush1.bf16.msra.mxu0 %v4413_v9  ;;  %3702 = vmatprep.subr.bf16.mxu1 %v4459_v39  ;;  %5571 = vst [vmem:[#allocation22_spill] sm:$0xff] %v4511_v49  ;;  %v4555_v28 = vpack.c.bf16 %v5441_v59, %v5442_v22  ;;  %v1297_v59 = vld [vmem:[#allocation7 + $0x118] sm:$0xff]  ;;  %v4572_v22 = vpack.c.bf16 %v2116_v24, %v2112_v27  ;;  %v1371_v63 = vand.u32 4294901760, %v1299_v6 }
 0x22c   :  { %3558 = vmatprep.subr.bf16.mxu0 %v4451_v36  ;;  %5573 = vst [vmem:[#allocation24_spill] sm:$0xff] %v4530_v1  ;;  %v4569_v17 = vpack.c.bf16 %v5450_v46, %v5451_v48  ;;  %v2118_v0 = vand.u32 4294901760, %v1297_v59  ;;  %v1369_v46 = vand.u32 4294901760, %v1294_v35  ;;  %v1373_v48 = vand.u32 4294901760, %v1298_v38 }
 0x22d   :  { %5574 = vst [vmem:[#allocation25_spill] sm:$0xff] %v4555_v28  ;;  %5577 = vst [vmem:[#allocation28_spill] sm:$0xff] %v4572_v22  ;;  %v5595_v39 = vand.u32 4294901760, %v4430_v19  ;;  %v5596_v16 = vand.u32 4294901760, %v4433_v25  ;;  %v4744_v9 = vsub.f32 %v1299_v6, %v1371_v63  ;;  %v1304_v6 = vld [vmem:[#allocation7 + $0x150] sm:$0xff] }
 0x22e   :  { %3704 = vmatpush1.bf16.msra.mxu1 %v4478_v55  ;;  %5576 = vst [vmem:[#allocation27_spill] sm:$0xff] %v4569_v17 }
 0x22f   :  { %3560 = vmatpush1.bf16.msra.mxu0 %v4465_v40  ;;  %3706 = vmatprep.subr.bf16.mxu1 %v4511_v49  ;;  %v4619_v40 = vpack.c.bf16 %v2122_v29, %v2118_v0  ;;  %v4641_v36 = vsub.f32 %v4430_v19, %v5595_v39 }
 0x230   :  { %3562 = vmatprep.subr.bf16.mxu0 %v4503_v42  ;;  %v5580_v42 = vand.u32 4294901760, %v4377_v14 }
 0x231   :  { %5590 = vst [vmem:[#allocation33_spill] sm:$0xff] %v4619_v40 }
 0x232   :  { %3708 = vmatpush1.bf16.msra.mxu1 %v4530_v1  ;;  %v5578_v1 = vand.u32 4294901760, %v4373_v12 }
 0x233   :  { %3564 = vmatpush1.bf16.msra.mxu0 %v4517_v50  ;;  %3710 = vmatprep.subr.bf16.mxu1 %v4563_v18  ;;  %v5579_v50 = vand.u32 4294901760, %v4375_v13  ;;  %v4589_v18 = vsub.f32 %v4377_v14, %v5580_v42  ;;  %v5587_v14 = vand.u32 4294901760, %v4391_v3 }
 0x234   :  { %3566 = vmatprep.subr.bf16.mxu0 %v4555_v28  ;;  %v4579_v28 = vsub.f32 %v4373_v12, %v5578_v1  ;;  %v5584_v1 = vand.u32 4294901760, %v4384_v51 }
 0x235   :  { %v4584_v49 = vsub.f32 %v4375_v13, %v5579_v50  ;;  %5581 = vst [vmem:[#allocation29_spill] sm:$0xff] %v4589_v18  ;;  %v5586_v13 = vand.u32 4294901760, %v4386_v54  ;;  %v4610_v42 = vsub.f32 %v4391_v3, %v5587_v14  ;;  %v5593_v3 = vand.u32 4294901760, %v4417_v11 }
 0x236   :  { %3712 = vmatpush1.bf16.msra.mxu1 %v4572_v22  ;;  %v4600_v12 = vsub.f32 %v4384_v51, %v5584_v1  ;;  %v4617_v22 = vpack.c.bf16 %v1371_v63, %v1367_v2  ;;  %v4621_v51 = vpack.c.bf16 %v1373_v48, %v1369_v46  ;;  %v2120_v1 = vand.u32 4294901760, %v1296_v23 }
 0x237   :  { %3568 = vmatpush1.bf16.msra.mxu0 %v4569_v17  ;;  %v5582_v17 = vand.u32 4294901760, %v4381_v61  ;;  %v4605_v50 = vsub.f32 %v4386_v54, %v5586_v13  ;;  %v5592_v54 = vand.u32 4294901760, %v4415_v10  ;;  %v4631_v14 = vsub.f32 %v4417_v11, %v5593_v3  ;;  %3714 = vmatprep.subr.bf16.mxu1 %v4619_v40  ;;  %v1309_v40 = vld [vmem:[#allocation7 + $0x178] sm:$0xff] }
 0x238   :  { %5585 = vst [vmem:[#allocation31_spill] sm:$0xff] %v4600_v12  ;;  %5589 = vst [vmem:[#allocation32_spill] sm:$0xff] %v4617_v22  ;;  %v5598_v3 = vand.u32 4294901760, %v4442_v32  ;;  %3570 = vmatprep.subr.bf16.mxu0 %v4617_v22  ;;  %v4742_v22 = vsub.f32 %v1295_v7, %v1367_v2  ;;  %v2130_v2 = vand.u32 4294901760, %v1309_v40 }
 0x239   :  { %v4594_v55 = vsub.f32 %v4381_v61, %v5582_v17  ;;  %v5588_v61 = vand.u32 4294901760, %v4393_v4  ;;  %5591 = vst [vmem:[#allocation34_spill] sm:$0xff] %v4621_v51  ;;  %v4626_v13 = vsub.f32 %v4415_v10, %v5592_v54  ;;  %v4646_v10 = vsub.f32 %v4433_v25, %v5596_v16 }
 0x23a   :  { %v5597_v54 = vand.u32 4294901760, %v4435_v26  ;;  %v5600_v16 = vand.u32 4294901760, %v4467_v44 }
 0x23b   :  { %5583 = vst [vmem:[#allocation30_spill] sm:$0xff] %v4594_v55  ;;  %v4615_v17 = vsub.f32 %v4393_v4, %v5588_v61  ;;  %v5594_v4 = vand.u32 4294901760, %v4419_v15  ;;  %3572 = vmatpush1.bf16.msra.mxu0 %v4621_v51  ;;  %v1303_v51 = vld [vmem:[#allocation7 + $0x148] sm:$0xff] }
 0x23c   :  { %v4651_v11 = vsub.f32 %v4435_v26, %v5597_v54  ;;  %v4667_v25 = vsub.f32 %v4467_v44, %v5600_v16  ;;  %v5601_v26 = vand.u32 4294901760, %v4469_v45  ;;  %v5604_v44 = vand.u32 4294901760, %v4485_v60 }
 0x23d   :  { %v4636_v61 = vsub.f32 %v4419_v15, %v5594_v4  ;;  %v4656_v15 = vsub.f32 %v4442_v32, %v5598_v3  ;;  %v5599_v4 = vand.u32 4294901760, %v4444_v34  ;;  %v5602_v32 = vand.u32 4294901760, %v4471_v47 }
 0x23e   :  { %v4672_v39 = vsub.f32 %v4469_v45, %v5601_v26  ;;  %v5605_v45 = vand.u32 4294901760, %v4487_v21 }
 0x23f   :  { %v4661_v19 = vsub.f32 %v4444_v34, %v5599_v4  ;;  %v4677_v54 = vsub.f32 %v4471_v47, %v5602_v32  ;;  %v5603_v34 = vand.u32 4294901760, %v4482_v58  ;;  %v4688_v4 = vsub.f32 %v4485_v60, %v5604_v44 }
 0x240   :  { %v4693_v16 = vsub.f32 %v4487_v21, %v5605_v45  ;;  %v5606_v47 = vand.u32 4294901760, %v4494_v31  ;;  %v5608_v60 = vand.u32 4294901760, %v4519_v52  ;;  %v5609_v21 = vand.u32 4294901760, %v4521_v53 }
 0x241   :  { %v4682_v3 = vsub.f32 %v4482_v58, %v5603_v34  ;;  %v5607_v58 = vand.u32 4294901760, %v4496_v41 }
 0x242   :  { %v4698_v26 = vsub.f32 %v4494_v31, %v5606_v47  ;;  %v4709_v34 = vsub.f32 %v4519_v52, %v5608_v60  ;;  %v4714_v44 = vsub.f32 %v4521_v53, %v5609_v21  ;;  %v5610_v31 = vand.u32 4294901760, %v4523_v20 }
 0x243   :  { %v4703_v32 = vsub.f32 %v4496_v41, %v5607_v58  ;;  %v5611_v41 = vand.u32 4294901760, %v4534_v33  ;;  %v1300_v58 = vld [vmem:[#allocation7 + $0x130] sm:$0xff]  ;;  %v5612_v52 = vand.u32 4294901760, %v4537_v57  ;;  %v5613_v53 = vand.u32 4294901760, %v4539_v56 }
 0x244   :  { %v4719_v45 = vsub.f32 %v4523_v20, %v5610_v31  ;;  %v4737_v20 = vsub.f32 %v4546_v37, %v2112_v27  ;;  %v4740_v31 = vsub.f32 %v4548_v30, %v2116_v24  ;;  %v4752_v27 = vsub.f32 %v1298_v38, %v1373_v48 }
 0x245   :  { %v4724_v47 = vsub.f32 %v4534_v33, %v5611_v41  ;;  %v4729_v60 = vsub.f32 %v4537_v57, %v5612_v52  ;;  %v4734_v21 = vsub.f32 %v4539_v56, %v5613_v53  ;;  %v1307_v33 = vld [vmem:[#allocation7 + $0x168] sm:$0xff]  ;;  %v1305_v41 = vld [vmem:[#allocation7 + $0x158] sm:$0xff]  ;;  %v4746_v57 = vsub.f32 %v1297_v59, %v2118_v0  ;;  %v1306_v56 = vld [vmem:[#allocation7 + $0x160] sm:$0xff] }
 0x246   :  { %v4748_v52 = vsub.f32 %v1301_v62, %v2122_v29  ;;  %v4750_v53 = vsub.f32 %v1294_v35, %v1369_v46  ;;  %v2124_v37 = vand.u32 4294901760, %v1300_v58  ;;  %v4754_v24 = vsub.f32 %v1296_v23, %v2120_v1  ;;  %v1308_v59 = vld [vmem:[#allocation7 + $0x170] sm:$0xff] }
 0x247   :  { %v1375_v30 = vand.u32 4294901760, %v1303_v51  ;;  %v1379_v5 = vand.u32 4294901760, %v1307_v33  ;;  %v2126_v43 = vand.u32 4294901760, %v1305_v41  ;;  %v1377_v0 = vand.u32 4294901760, %v1302_v8 }
 0x248   :  { %v4756_v7 = vpack.c.bf16 %v2124_v37, %v2120_v1  ;;  %v4758_v63 = vsub.f32 %v1300_v58, %v2124_v37  ;;  %v1381_v62 = vand.u32 4294901760, %v1306_v56  ;;  %v4771_v48 = vsub.f32 %v1309_v40, %v2130_v2 }
 0x249   :  { %v4760_v29 = vpack.c.bf16 %v1379_v5, %v1375_v30  ;;  %v4762_v35 = vsub.f32 %v1303_v51, %v1375_v30  ;;  %v4764_v38 = vsub.f32 %v1307_v33, %v1379_v5  ;;  %v4766_v23 = vpack.c.bf16 %v2130_v2, %v2126_v43 }
 0x24a   :  { %5614 = vst [vmem:[#allocation35_spill] sm:$0xff] %v4756_v7  ;;  %3716 = vmatpush1.bf16.msra.mxu1 %v4756_v7  ;;  %v4769_v46 = vsub.f32 %v1305_v41, %v2126_v43  ;;  %v4773_v1 = vpack.c.bf16 %v1381_v62, %v1377_v0  ;;  %v4775_v58 = vsub.f32 %v1302_v8, %v1377_v0  ;;  %v2128_v5 = vand.u32 4294901760, %v1304_v6 }
 0x24b   :  { %5615 = vst [vmem:[#allocation36_spill] sm:$0xff] %v4760_v29  ;;  %5616 = vst [vmem:[#allocation37_spill] sm:$0xff] %v4762_v35  ;;  %3574 = vmatprep.subr.bf16.mxu0 %v4760_v29  ;;  %3718 = vmatprep.subr.bf16.mxu1 %v4766_v23  ;;  %v4779_v51 = vsub.f32 %v1306_v56, %v1381_v62  ;;  %v2132_v33 = vand.u32 4294901760, %v1308_v59  ;;  %v5494_v37 = vand.u32 4294901760, %v4579_v28  ;;  %v5495_v43 = vand.u32 4294901760, %v4584_v49 }
 0x24c   :  { %5617 = vst [vmem:[#allocation38_spill] sm:$0xff] %v4764_v38  ;;  %5618 = vst [vmem:[#allocation39_spill] sm:$0xff] %v4766_v23  ;;  %3576 = vmatpush1.bf16.msra.mxu0 %v4773_v1  ;;  %v5500_v40 = vand.u32 4294901760, %v4589_v18  ;;  %v4789_v2 = vsub.f32 %v1304_v6, %v2128_v5  ;;  %v5626_v8 = vand.u32 4294901760, %v4594_v55  ;;  %v5627_v6 = vand.u32 4294901760, %v4600_v12 }
 0x24d   :  { %5619 = vst [vmem:[#allocation40_spill] sm:$0xff] %v4769_v46  ;;  %5620 = vst [vmem:[#allocation41_spill] sm:$0xff] %v4773_v1  ;;  %v4787_v30 = vpack.c.bf16 %v2132_v33, %v2128_v5  ;;  %v4791_v56 = vsub.f32 %v1308_v59, %v2132_v33  ;;  %v1438_v0 = vsub.f32 %v4579_v28, %v5494_v37  ;;  %v5511_v33 = vand.u32 4294901760, %v4605_v50 }
 0x24e   :  { %5621 = vst [vmem:[#allocation42_spill] sm:$0xff] %v4775_v58  ;;  %5622 = vst [vmem:[#allocation43_spill] sm:$0xff] %v4779_v51  ;;  %v1450_v62 = vsub.f32 %v4584_v49, %v5495_v43  ;;  %v2189_v41 = vsub.f32 %v4589_v18, %v5500_v40  ;;  %v2201_v1 = vsub.f32 %v4594_v55, %v5626_v8  ;;  %v5519_v37 = vand.u32 4294901760, %v4610_v42 }
 0x24f   :  { %5623 = vst [vmem:[#allocation44_spill] sm:$0xff] %v4787_v30  ;;  %5624 = vst [vmem:[#allocation45_spill] sm:$0xff] %v4789_v2  ;;  %v1444_v59 = vsub.f32 %v4600_v12, %v5627_v6  ;;  %3720 = vmatpush1.bf16.msra.mxu1 %v4787_v30  ;;  %v1439_v5 = vand.u32 4294901760, %v1438_v0  ;;  %v5512_v43 = vand.u32 4294901760, %v4615_v17  ;;  %v1456_v8 = vsub.f32 %v4605_v50, %v5511_v33 }
 0x250   :  { %5625 = vst [vmem:[#allocation46_spill] sm:$0xff] %v4791_v56  ;;  %v1451_v23 = vand.u32 4294901760, %v1450_v62  ;;  %v2190_v29 = vand.u32 4294901760, %v2189_v41  ;;  %v2202_v40 = vand.u32 4294901760, %v2201_v1  ;;  %v2195_v6 = vsub.f32 %v4610_v42, %v5519_v37 }
 0x251   :  { %v1445_v7 = vand.u32 4294901760, %v1444_v59  ;;  %v2207_v0 = vsub.f32 %v4615_v17, %v5512_v43  ;;  %v5516_v30 = vand.u32 4294901760, %v4626_v13  ;;  %v5513_v41 = vand.u32 4294901760, %v4631_v14 }
 0x252   :  { %v3577_v12 = vpack.c.bf16 %v1451_v23, %v1439_v5  ;;  %v3721_v55 = vpack.c.bf16 %v2202_v40, %v2190_v29  ;;  %v5514_v1 = vand.u32 4294901760, %v4636_v61  ;;  %v1457_v62 = vand.u32 4294901760, %v1456_v8 }
 0x253   :  { %v2196_v59 = vand.u32 4294901760, %v2195_v6  ;;  %v2208_v18 = vand.u32 4294901760, %v2207_v0  ;;  %v1462_v33 = vsub.f32 %v4626_v13, %v5516_v30  ;;  %v1474_v43 = vsub.f32 %v4631_v14, %v5513_v41 }
 0x254   :  { %3578 = vmatprep.subr.bf16.mxu0 %v3577_v12  ;;  %3722 = vmatprep.subr.bf16.mxu1 %v3721_v55  ;;  %v2213_v29 = vsub.f32 %v4636_v61, %v5514_v1  ;;  %v5515_v23 = vand.u32 4294901760, %v4641_v36  ;;  %v5517_v40 = vand.u32 4294901760, %v4646_v10  ;;  %v4835_v5 = vpack.c.bf16 %v1457_v62, %v1445_v7 }
 0x255   :  { %v4837_v8 = vpack.c.bf16 %v2208_v18, %v2196_v59  ;;  %v1463_v6 = vand.u32 4294901760, %v1462_v33  ;;  %v5518_v12 = vand.u32 4294901760, %v4651_v11  ;;  %v1475_v55 = vand.u32 4294901760, %v1474_v43 }
 0x256   :  { %5628 = vst [vmem:[#allocation47_spill] sm:$0xff] %v4835_v5  ;;  %v2214_v0 = vand.u32 4294901760, %v2213_v29  ;;  %v2225_v41 = vsub.f32 %v4641_v36, %v5515_v23  ;;  %v1468_v1 = vsub.f32 %v4646_v10, %v5517_v40  ;;  %v5520_v18 = vand.u32 4294901760, %v4656_v15 }
 0x257   :  { %5629 = vst [vmem:[#allocation48_spill] sm:$0xff] %v4837_v8  ;;  %v1480_v7 = vsub.f32 %v4651_v11, %v5518_v12  ;;  %v5521_v33 = vand.u32 4294901760, %v4661_v19  ;;  %v5522_v62 = vand.u32 4294901760, %v4667_v25  ;;  %v4852_v43 = vpack.c.bf16 %v1475_v55, %v1463_v6 }
 0x258   :  { %v2226_v59 = vand.u32 4294901760, %v2225_v41  ;;  %v1469_v29 = vand.u32 4294901760, %v1468_v1  ;;  %v5523_v23 = vand.u32 4294901760, %v4672_v39  ;;  %v2219_v40 = vsub.f32 %v4656_v15, %v5520_v18 }
 0x259   :  { %5630 = vst [vmem:[#allocation49_spill] sm:$0xff] %v4852_v43  ;;  %v1481_v30 = vand.u32 4294901760, %v1480_v7  ;;  %v2231_v12 = vsub.f32 %v4661_v19, %v5521_v33  ;;  %v1486_v37 = vsub.f32 %v4667_v25, %v5522_v62  ;;  %v5526_v1 = vand.u32 4294901760, %v4677_v54 }
 0x25a   :  { %v4864_v8 = vpack.c.bf16 %v2226_v59, %v2214_v0  ;;  %v1498_v41 = vsub.f32 %v4672_v39, %v5523_v23  ;;  %v5524_v6 = vand.u32 4294901760, %v4682_v3  ;;  %v2220_v7 = vand.u32 4294901760, %v2219_v40 }
 0x25b   :  { %v4871_v55 = vpack.c.bf16 %v1481_v30, %v1469_v29  ;;  %v2232_v18 = vand.u32 4294901760, %v2231_v12  ;;  %v1487_v43 = vand.u32 4294901760, %v1486_v37  ;;  %v2237_v62 = vsub.f32 %v4677_v54, %v5526_v1 }
 0x25c   :  { %5631 = vst [vmem:[#allocation50_spill] sm:$0xff] %v4864_v8  ;;  %v1499_v33 = vand.u32 4294901760, %v1498_v41  ;;  %v2249_v0 = vsub.f32 %v4682_v3, %v5524_v6  ;;  %v5525_v59 = vand.u32 4294901760, %v4688_v4  ;;  %v5527_v8 = vand.u32 4294901760, %v4693_v16 }
 0x25d   :  { %5632 = vst [vmem:[#allocation51_spill] sm:$0xff] %v4871_v55  ;;  %v4880_v23 = vpack.c.bf16 %v2232_v18, %v2220_v7  ;;  %v5528_v30 = vand.u32 4294901760, %v4698_v26  ;;  %v5529_v40 = vand.u32 4294901760, %v4703_v32  ;;  %v2238_v12 = vand.u32 4294901760, %v2237_v62 }
 0x25e   :  { %v4885_v37 = vpack.c.bf16 %v1499_v33, %v1487_v43  ;;  %v2250_v29 = vand.u32 4294901760, %v2249_v0  ;;  %v1492_v41 = vsub.f32 %v4688_v4, %v5525_v59  ;;  %v1504_v6 = vsub.f32 %v4693_v16, %v5527_v8 }
 0x25f   :  { %5633 = vst [vmem:[#allocation52_spill] sm:$0xff] %v4880_v23  ;;  %v2243_v18 = vsub.f32 %v4698_v26, %v5528_v30  ;;  %v2255_v7 = vsub.f32 %v4703_v32, %v5529_v40  ;;  %v5530_v33 = vand.u32 4294901760, %v4709_v34  ;;  %v5531_v0 = vand.u32 4294901760, %v4714_v44 }
 0x260   :  { %5634 = vst [vmem:[#allocation53_spill] sm:$0xff] %v4885_v37  ;;  %v4900_v62 = vpack.c.bf16 %v2250_v29, %v2238_v12  ;;  %v1493_v43 = vand.u32 4294901760, %v1492_v41  ;;  %v5532_v59 = vand.u32 4294901760, %v4719_v45  ;;  %v1505_v1 = vand.u32 4294901760, %v1504_v6 }
 0x261   :  { %v2244_v37 = vand.u32 4294901760, %v2243_v18  ;;  %v2256_v8 = vand.u32 4294901760, %v2255_v7  ;;  %v1510_v30 = vsub.f32 %v4709_v34, %v5530_v33  ;;  %v1522_v40 = vsub.f32 %v4714_v44, %v5531_v0 }
 0x262   :  { %5635 = vst [vmem:[#allocation54_spill] sm:$0xff] %v4900_v62  ;;  %v2261_v12 = vsub.f32 %v4719_v45, %v5532_v59  ;;  %v5533_v29 = vand.u32 4294901760, %v4724_v47  ;;  %v5534_v41 = vand.u32 4294901760, %v4729_v60  ;;  %v4915_v62 = vpack.c.bf16 %v1505_v1, %v1493_v43 }
 0x263   :  { %v4917_v6 = vpack.c.bf16 %v2256_v8, %v2244_v37  ;;  %v1511_v18 = vand.u32 4294901760, %v1510_v30  ;;  %v5535_v7 = vand.u32 4294901760, %v4734_v21  ;;  %v1523_v33 = vand.u32 4294901760, %v1522_v40 }
 0x264   :  { %5636 = vst [vmem:[#allocation55_spill] sm:$0xff] %v4915_v62  ;;  %v2262_v23 = vand.u32 4294901760, %v2261_v12  ;;  %v2273_v0 = vsub.f32 %v4724_v47, %v5533_v29  ;;  %v1516_v59 = vsub.f32 %v4729_v60, %v5534_v41  ;;  %v5536_v8 = vand.u32 4294901760, %v4737_v20 }
 0x265   :  { %5637 = vst [vmem:[#allocation56_spill] sm:$0xff] %v4917_v6  ;;  %v1528_v1 = vsub.f32 %v4734_v21, %v5535_v7  ;;  %v5537_v30 = vand.u32 4294901760, %v4740_v31  ;;  %v5538_v37 = vand.u32 4294901760, %v4742_v22  ;;  %v4932_v40 = vpack.c.bf16 %v1523_v33, %v1511_v18 }
 0x266   :  { %v2274_v43 = vand.u32 4294901760, %v2273_v0  ;;  %v1517_v12 = vand.u32 4294901760, %v1516_v59  ;;  %v5539_v29 = vand.u32 4294901760, %v4744_v9  ;;  %v2267_v41 = vsub.f32 %v4737_v20, %v5536_v8 }
 0x267   :  { %5638 = vst [vmem:[#allocation57_spill] sm:$0xff] %v4932_v40  ;;  %v1529_v6 = vand.u32 4294901760, %v1528_v1  ;;  %v2279_v7 = vsub.f32 %v4740_v31, %v5537_v30  ;;  %v1534_v62 = vsub.f32 %v4742_v22, %v5538_v37  ;;  %v5542_v33 = vand.u32 4294901760, %v4746_v57 }
 0x268   :  { %v4944_v55 = vpack.c.bf16 %v2274_v43, %v2262_v23  ;;  %v1546_v59 = vsub.f32 %v4744_v9, %v5539_v29  ;;  %v5540_v0 = vand.u32 4294901760, %v4748_v52  ;;  %v2268_v1 = vand.u32 4294901760, %v2267_v41 }
 0x269   :  { %v4951_v18 = vpack.c.bf16 %v1529_v6, %v1517_v12  ;;  %v2280_v8 = vand.u32 4294901760, %v2279_v7  ;;  %v1535_v40 = vand.u32 4294901760, %v1534_v62  ;;  %v2285_v37 = vsub.f32 %v4746_v57, %v5542_v33 }
 0x26a   :  { %5639 = vst [vmem:[#allocation58_spill] sm:$0xff] %v4944_v55  ;;  %v1547_v30 = vand.u32 4294901760, %v1546_v59  ;;  %v2297_v23 = vsub.f32 %v4748_v52, %v5540_v0  ;;  %v5541_v43 = vand.u32 4294901760, %v4750_v53  ;;  %v5543_v55 = vand.u32 4294901760, %v4752_v27 }
 0x26b   :  { %5640 = vst [vmem:[#allocation59_spill] sm:$0xff] %v4951_v18  ;;  %v4960_v29 = vpack.c.bf16 %v2280_v8, %v2268_v1  ;;  %v5544_v6 = vand.u32 4294901760, %v4754_v24  ;;  %v5545_v41 = vand.u32 4294901760, %v4758_v63  ;;  %v2286_v7 = vand.u32 4294901760, %v2285_v37 }
 0x26c   :  { %v4965_v62 = vpack.c.bf16 %v1547_v30, %v1535_v40  ;;  %v2298_v12 = vand.u32 4294901760, %v2297_v23  ;;  %v1540_v59 = vsub.f32 %v4750_v53, %v5541_v43  ;;  %v1552_v0 = vsub.f32 %v4752_v27, %v5543_v55 }
 0x26d   :  { %5641 = vst [vmem:[#allocation60_spill] sm:$0xff] %v4960_v29  ;;  %v2291_v8 = vsub.f32 %v4754_v24, %v5544_v6  ;;  %v2303_v1 = vsub.f32 %v4758_v63, %v5545_v41  ;;  %v5546_v30 = vand.u32 4294901760, %v4762_v35  ;;  %v5547_v23 = vand.u32 4294901760, %v4764_v38 }
 0x26e   :  { %5642 = vst [vmem:[#allocation61_spill] sm:$0xff] %v4965_v62  ;;  %v4980_v37 = vpack.c.bf16 %v2298_v12, %v2286_v7  ;;  %v1541_v40 = vand.u32 4294901760, %v1540_v59  ;;  %v5548_v43 = vand.u32 4294901760, %v4769_v46  ;;  %v1553_v33 = vand.u32 4294901760, %v1552_v0 }
 0x26f   :  { %v2292_v62 = vand.u32 4294901760, %v2291_v8  ;;  %v2304_v55 = vand.u32 4294901760, %v2303_v1  ;;  %v1558_v6 = vsub.f32 %v4762_v35, %v5546_v30  ;;  %v1570_v41 = vsub.f32 %v4764_v38, %v5547_v23 }
 0x270   :  { %5643 = vst [vmem:[#allocation62_spill] sm:$0xff] %v4980_v37  ;;  %v2309_v7 = vsub.f32 %v4769_v46, %v5548_v43  ;;  %v5549_v12 = vand.u32 4294901760, %v4771_v48  ;;  %v5550_v59 = vand.u32 4294901760, %v4775_v58  ;;  %v4995_v37 = vpack.c.bf16 %v1553_v33, %v1541_v40 }
 0x271   :  { %v4997_v0 = vpack.c.bf16 %v2304_v55, %v2292_v62  ;;  %v1559_v8 = vand.u32 4294901760, %v1558_v6  ;;  %v5551_v1 = vand.u32 4294901760, %v4779_v51  ;;  %v1571_v30 = vand.u32 4294901760, %v1570_v41 }
 0x272   :  { %5644 = vst [vmem:[#allocation63_spill] sm:$0xff] %v4995_v37  ;;  %v2310_v29 = vand.u32 4294901760, %v2309_v7  ;;  %v2321_v23 = vsub.f32 %v4771_v48, %v5549_v12  ;;  %v1564_v43 = vsub.f32 %v4775_v58, %v5550_v59  ;;  %v2314_v55 = vand.u32 4294901760, %v4789_v2  ;;  %v5646_v12 = vld [vmem:[#allocation29_spill] sm:$0xff] }
 0x273   :  { %5645 = vst [vmem:[#allocation64_spill] sm:$0xff] %v4997_v0  ;;  %v1576_v33 = vsub.f32 %v4779_v51, %v5551_v1  ;;  %v2326_v6 = vand.u32 4294901760, %v4791_v56  ;;  %v5013_v62 = vpack.c.bf16 %v1571_v30, %v1559_v8  ;;  %v5647_v0 = vld [vmem:[#allocation30_spill] sm:$0xff]  ;;  %v5648_v1 = vld [vmem:[#allocation31_spill] sm:$0xff]  ;;  %v5650_v41 = vmov %v4779_v51 }
 0x274   :  { %v2322_v40 = vand.u32 4294901760, %v2321_v23  ;;  %v1565_v7 = vand.u32 4294901760, %v1564_v43  ;;  %v2315_v59 = vsub.f32 %v4789_v2, %v2314_v55  ;;  %v5655_v37 = vand.u32 4294901760, %v5647_v0 }
 0x275   :  { %v1577_v18 = vand.u32 4294901760, %v1576_v33  ;;  %v2327_v5 = vsub.f32 %v4791_v56, %v2326_v6  ;;  %v5658_v51 = vand.u32 4294901760, %v4605_v50  ;;  %v5660_v30 = vand.u32 4294901760, %v4610_v42 }
 0x276   :  { %v5021_v58 = vpack.c.bf16 %v2322_v40, %v2310_v29  ;;  %v2316_v8 = vand.u32 4294901760, %v2315_v59  ;;  %v5652_v29 = vand.u32 4294901760, %v4584_v49  ;;  %v5661_v2 = vand.u32 4294901760, %v4615_v17 }
 0x277   :  { %v5029_v23 = vpack.c.bf16 %v1577_v18, %v1565_v7  ;;  %v2328_v33 = vand.u32 4294901760, %v2327_v5  ;;  %v5649_v5 = vld [vmem:[#allocation42_spill] sm:$0xff]  ;;  %v5654_v18 = vand.u32 4294901760, %v5646_v12  ;;  %v5657_v7 = vand.u32 4294901760, %v5648_v1 }
 0x278   :  { %v5091_v56 = vpack.c.bf16 %v5661_v2, %v5660_v30  ;;  %v5672_v2 = vand.u32 4294901760, %v4656_v15  ;;  %v5673_v30 = vand.u32 4294901760, %v4661_v19 }
 0x279   :  { %v5041_v43 = vpack.c.bf16 %v2328_v33, %v2316_v8  ;;  %v5651_v8 = vand.u32 4294901760, %v4579_v28  ;;  %v5079_v59 = vpack.c.bf16 %v5655_v37, %v5654_v18  ;;  %v5085_v40 = vpack.c.bf16 %v5658_v51, %v5657_v7 }
 0x27a   :  { %5662 = vst [vmem:[#allocation42_spill] sm:$0xff] %v5091_v56  ;;  %v5666_v37 = vand.u32 4294901760, %v4636_v61  ;;  %v5667_v18 = vand.u32 4294901760, %v4641_v36  ;;  %v5669_v51 = vand.u32 4294901760, %v4646_v10  ;;  %v5670_v7 = vand.u32 4294901760, %v4651_v11 }
 0x27b   :  { %v5073_v33 = vpack.c.bf16 %v5652_v29, %v5651_v8  ;;  %5656 = vst [vmem:[#allocation30_spill] sm:$0xff] %v5079_v59  ;;  %5659 = vst [vmem:[#allocation31_spill] sm:$0xff] %v5085_v40  ;;  %v5663_v29 = vand.u32 4294901760, %v4626_v13  ;;  %v5664_v8 = vand.u32 4294901760, %v4631_v14  ;;  %v5115_v56 = vpack.c.bf16 %v5673_v30, %v5672_v2 }
 0x27c   :  { %v5103_v59 = vpack.c.bf16 %v5667_v18, %v5666_v37  ;;  %v5109_v40 = vpack.c.bf16 %v5670_v7, %v5669_v51  ;;  %v5678_v37 = vand.u32 4294901760, %v4677_v54  ;;  %v5679_v18 = vand.u32 4294901760, %v4682_v3 }
 0x27d   :  { %5653 = vst [vmem:[#allocation29_spill] sm:$0xff] %v5073_v33  ;;  %v5097_v33 = vpack.c.bf16 %v5664_v8, %v5663_v29  ;;  %5674 = vst [vmem:[#allocation67_spill] sm:$0xff] %v5115_v56  ;;  %v5675_v29 = vand.u32 4294901760, %v4667_v25  ;;  %v5676_v8 = vand.u32 4294901760, %v4672_v39  ;;  %v5681_v51 = vand.u32 4294901760, %v4688_v4 }
 0x27e   :  { %5668 = vst [vmem:[#allocation65_spill] sm:$0xff] %v5103_v59  ;;  %5671 = vst [vmem:[#allocation66_spill] sm:$0xff] %v5109_v40  ;;  %v5127_v59 = vpack.c.bf16 %v5679_v18, %v5678_v37  ;;  %v5682_v7 = vand.u32 4294901760, %v4693_v16  ;;  %v5684_v2 = vand.u32 4294901760, %v4698_v26  ;;  %v5685_v30 = vand.u32 4294901760, %v4703_v32 }
 0x27f   :  { %5665 = vst [vmem:[#allocation43_spill] sm:$0xff] %v5097_v33  ;;  %v5121_v33 = vpack.c.bf16 %v5676_v8, %v5675_v29  ;;  %v5687_v29 = vand.u32 4294901760, %v4709_v34  ;;  %v5688_v8 = vand.u32 4294901760, %v4714_v44  ;;  %v5690_v37 = vand.u32 4294901760, %v4719_v45 }
 0x280   :  { %5680 = vst [vmem:[#allocation69_spill] sm:$0xff] %v5127_v59  ;;  %v5133_v40 = vpack.c.bf16 %v5682_v7, %v5681_v51  ;;  %v5139_v56 = vpack.c.bf16 %v5685_v30, %v5684_v2  ;;  %v5691_v18 = vand.u32 4294901760, %v4724_v47  ;;  %v5693_v51 = vand.u32 4294901760, %v4729_v60 }
 0x281   :  { %5677 = vst [vmem:[#allocation68_spill] sm:$0xff] %v5121_v33  ;;  %v5145_v33 = vpack.c.bf16 %v5688_v8, %v5687_v29  ;;  %v5694_v7 = vand.u32 4294901760, %v4734_v21  ;;  %v5696_v2 = vand.u32 4294901760, %v4737_v20  ;;  %v5697_v30 = vand.u32 4294901760, %v4740_v31 }
 0x282   :  { %5683 = vst [vmem:[#allocation70_spill] sm:$0xff] %v5133_v40  ;;  %5686 = vst [vmem:[#allocation71_spill] sm:$0xff] %v5139_v56  ;;  %v5151_v59 = vpack.c.bf16 %v5691_v18, %v5690_v37  ;;  %v5699_v29 = vand.u32 4294901760, %v4742_v22  ;;  %v5700_v8 = vand.u32 4294901760, %v4744_v9  ;;  %v5702_v37 = vand.u32 4294901760, %v4746_v57 }
 0x283   :  { %5689 = vst [vmem:[#allocation72_spill] sm:$0xff] %v5145_v33  ;;  %v5157_v40 = vpack.c.bf16 %v5694_v7, %v5693_v51  ;;  %v5163_v56 = vpack.c.bf16 %v5697_v30, %v5696_v2  ;;  %v5703_v18 = vand.u32 4294901760, %v4748_v52  ;;  %v5705_v51 = vand.u32 4294901760, %v4750_v53 }
 0x284   :  { %5692 = vst [vmem:[#allocation73_spill] sm:$0xff] %v5151_v59  ;;  %v5169_v33 = vpack.c.bf16 %v5700_v8, %v5699_v29  ;;  %v5706_v7 = vand.u32 4294901760, %v4752_v27  ;;  %v5708_v2 = vand.u32 4294901760, %v4754_v24  ;;  %v5709_v30 = vand.u32 4294901760, %v4758_v63 }
 0x285   :  { %5695 = vst [vmem:[#allocation74_spill] sm:$0xff] %v5157_v40  ;;  %5698 = vst [vmem:[#allocation75_spill] sm:$0xff] %v5163_v56  ;;  %v5175_v59 = vpack.c.bf16 %v5703_v18, %v5702_v37  ;;  %v5711_v29 = vand.u32 4294901760, %v4762_v35  ;;  %v5712_v8 = vand.u32 4294901760, %v4764_v38  ;;  %v5714_v37 = vand.u32 4294901760, %v4769_v46 }
 0x286   :  { %5701 = vst [vmem:[#allocation76_spill] sm:$0xff] %v5169_v33  ;;  %v5181_v40 = vpack.c.bf16 %v5706_v7, %v5705_v51  ;;  %v5187_v56 = vpack.c.bf16 %v5709_v30, %v5708_v2  ;;  %v5715_v18 = vand.u32 4294901760, %v4771_v48  ;;  %v5717_v51 = vand.u32 4294901760, %v5649_v5 }
 0x287   :  { %5704 = vst [vmem:[#allocation77_spill] sm:$0xff] %v5175_v59  ;;  %v5193_v33 = vpack.c.bf16 %v5712_v8, %v5711_v29  ;;  %v5718_v7 = vand.u32 4294901760, %v5650_v41  ;;  %v5207_v2 = vpack.c.bf16 %v2326_v6, %v2314_v55  ;;  %v5719_v8 = vld [vmem:[#allocation12_spill] sm:$0xff]  ;;  %v5720_v6 = vld [vmem:[#allocation47_spill] sm:$0xff] }
 0x288   :  { %5707 = vst [vmem:[#allocation78_spill] sm:$0xff] %v5181_v40  ;;  %5710 = vst [vmem:[#allocation79_spill] sm:$0xff] %v5187_v56  ;;  %v5199_v59 = vpack.c.bf16 %v5715_v18, %v5714_v37 }
 0x289   :  { %5713 = vst [vmem:[#allocation80_spill] sm:$0xff] %v5193_v33  ;;  %v5205_v40 = vpack.c.bf16 %v5718_v7, %v5717_v51  ;;  %v5726_v7 = vld [vmem:[#allocation52_spill] sm:$0xff] }
 0x28a   :  { %5716 = vst [vmem:[#allocation81_spill] sm:$0xff] %v5199_v59 }
 0x2fc   :  { %v1254_v30 = vpop.f32.mrb[0].mxu1 }
 0x2fd   :  { %v1258_v56 = vmul.f32 0.16666667, %v1254_v30  ;;  %v3336_v35 = vpop.f32.mrb[1].mxu1  ;;  %v5727_v30 = vld [vmem:[#allocation53_spill] sm:$0xff] }
 0x2fe   :  { %v5721_v35 = vld [vmem:[#allocation48_spill] sm:$0xff] }
 0x2ff   :  { %v1259_v38 = vadd.f32 1e-05, %v1258_v56  ;;  %v5723_v56 = vld [vmem:[#allocation50_spill] sm:$0xff] }
 0x301   :  { %3896 = vrsqrt.f32 %v1259_v38  ;;  %v5722_v38 = vld [vmem:[#allocation49_spill] sm:$0xff] }
 0x30b   :  { %v3897_v29 = vpop.eup %3896 }
 0x30c   :  { %v1261_v33 = vmul.f32 %v3897_v29, %v5719_v8  ;;  %v5728_v29 = vld [vmem:[#allocation54_spill] sm:$0xff]  ;;  %v5729_v8 = vld [vmem:[#allocation55_spill] sm:$0xff] }
 0x30e   :  { %v1333_v46 = vsel %vm70_vm1, %v1261_v33, 0  ;;  %v5724_v33 = vmov 0.0  }
 0x30f   :  { %v5211_v37 = vand.u32 4294901760, %v1333_v46 }
 0x311   :  { %v1425_v18 = vsub.f32 %v1333_v46, %v5211_v37  ;;  %v5725_v46 = vld [vmem:[#allocation51_spill] sm:$0xff] }
 0x313   :  { %v5214_v59 = vand.u32 4294901760, %v1425_v18 }
 0x315   :  { %v1427_v51 = vsub.f32 %v1425_v18, %v5214_v59 }
 0x317   :  { %v1428_v55 = vand.u32 4294901760, %v1427_v51  ;;  %v5730_v51 = vld [vmem:[#allocation56_spill] sm:$0xff] }
 0x319   :  { %1429 = vmatmul.mubr.f32.vlgmr.msra.gmra.mrb[2].mxu0 %v1428_v55  ;;  %2180 = vmatmul.mubr.f32.vlgmr.msra.gmra.mrb[2].mxu1 %v1428_v55  ;;  %v5731_v55 = vld [vmem:[#allocation57_spill] sm:$0xff] }
 0x31a   :  { %3580 = vmatpush1.bf16.msra.mxu0 %v5720_v6  ;;  %3724 = vmatpush1.bf16.msra.mxu1 %v5721_v35  ;;  %v5732_v6 = vld [vmem:[#allocation58_spill] sm:$0xff]  ;;  %v5733_v35 = vld [vmem:[#allocation59_spill] sm:$0xff] }
 0x31b   :  { %3582 = vmatprep.subr.bf16.mxu0 %v5722_v38  ;;  %3726 = vmatprep.subr.bf16.mxu1 %v5723_v56  ;;  %v5734_v38 = vld [vmem:[#allocation60_spill] sm:$0xff]  ;;  %v5735_v56 = vld [vmem:[#allocation61_spill] sm:$0xff] }
 0x31c   :  { %1619 = vmatprep.mubr.f32.mxu0 %v5724_v33  ;;  %2370 = vmatprep.mubr.f32.mxu1 %v5724_v33 }
 0x31e   :  { %3584 = vmatpush1.bf16.msra.mxu0 %v5725_v46  ;;  %3728 = vmatpush1.bf16.msra.mxu1 %v5726_v7  ;;  %v5736_v46 = vld [vmem:[#allocation62_spill] sm:$0xff]  ;;  %v5737_v7 = vld [vmem:[#allocation63_spill] sm:$0xff] }
 0x31f   :  { %3586 = vmatprep.subr.bf16.mxu0 %v5727_v30  ;;  %3730 = vmatprep.subr.bf16.mxu1 %v5728_v29  ;;  %v5738_v30 = vld [vmem:[#allocation64_spill] sm:$0xff]  ;;  %v5739_v29 = vpack.c.bf16 %v4584_v49, %v4579_v28  ;;  %v5743_v28 = vpack.c.bf16 %v4631_v14, %v4626_v13  ;;  %v5744_v49 = vpack.c.bf16 %v4641_v36, %v4636_v61 }
 0x320   :  { %v5748_v36 = vpack.c.bf16 %v4682_v3, %v4677_v54  ;;  %v5749_v13 = vpack.c.bf16 %v4693_v16, %v4688_v4  ;;  %v5750_v14 = vpack.c.bf16 %v4703_v32, %v4698_v26  ;;  %v5751_v61 = vpack.c.bf16 %v4714_v44, %v4709_v34  ;;  %v5759_v3 = vld [vmem:[#allocation38_spill] sm:$0xff]  ;;  %v5760_v4 = vld [vmem:[#allocation37_spill] sm:$0xff]  ;;  %v5762_v26 = vld [vmem:[#allocation40_spill] sm:$0xff] }
 0x321   :  { %v5758_v54 = vpack.c.bf16 %v4758_v63, %v4754_v24  ;;  %v5761_v16 = vpack.c.bf16 %v5759_v3, %v5760_v4  ;;  %v5765_v32 = vld [vmem:[#allocation46_spill] sm:$0xff]  ;;  %v5766_v34 = vld [vmem:[#allocation45_spill] sm:$0xff]  ;;  %v5778_v24 = vld [vmem:[#allocation23_spill] sm:$0xff] }
 0x322   :  { %3588 = vmatpush1.bf16.msra.mxu0 %v5729_v8  ;;  %3732 = vmatpush1.bf16.msra.mxu1 %v5730_v51  ;;  %v5740_v8 = vpack.c.bf16 %v5647_v0, %v5646_v12  ;;  %v5767_v44 = vpack.c.bf16 %v5765_v32, %v5766_v34  ;;  %v5779_v63 = vld [vmem:[#allocation24_spill] sm:$0xff]  ;;  %v5781_v12 = vld [vmem:[#allocation26_spill] sm:$0xff]  ;;  %v5782_v0 = vld [vmem:[#allocation27_spill] sm:$0xff] }
 0x323   :  { %3590 = vmatprep.subr.bf16.mxu0 %v5731_v55  ;;  %3734 = vmatprep.subr.bf16.mxu1 %v5732_v6  ;;  %v5789_v51 = vld [vmem:[#allocation39_spill] sm:$0xff]  ;;  %v5790_v55 = vld [vmem:[#allocation41_spill] sm:$0xff]  ;;  %v5791_v6 = vld [vmem:[#allocation44_spill] sm:$0xff] }
 0x326   :  { %3592 = vmatpush1.bf16.msra.mxu0 %v5733_v35  ;;  %3736 = vmatpush1.bf16.msra.mxu1 %v5734_v38  ;;  %v5792_v35 = vld [vmem:[#allocation29_spill] sm:$0xff]  ;;  %v5793_v38 = vld [vmem:[#allocation30_spill] sm:$0xff] }
 0x327   :  { %3594 = vmatprep.subr.bf16.mxu0 %v5735_v56  ;;  %3738 = vmatprep.subr.bf16.mxu1 %v5736_v46  ;;  %v5794_v56 = vld [vmem:[#allocation31_spill] sm:$0xff]  ;;  %v5795_v46 = vld [vmem:[#allocation42_spill] sm:$0xff] }
 0x32a   :  { %3596 = vmatpush1.bf16.msra.mxu0 %v5737_v7  ;;  %3740 = vmatpush1.bf16.msra.mxu1 %v5738_v30  ;;  %v5796_v7 = vld [vmem:[#allocation43_spill] sm:$0xff]  ;;  %v5797_v30 = vld [vmem:[#allocation65_spill] sm:$0xff] }
 0x32b   :  { %3598 = vmatprep.subr.bf16.mxu0 %v5013_v62  ;;  %3742 = vmatprep.subr.bf16.mxu1 %v5021_v58  ;;  %v5741_v62 = vpack.c.bf16 %v4605_v50, %v5648_v1  ;;  %v5742_v58 = vpack.c.bf16 %v4615_v17, %v4610_v42  ;;  %v5745_v50 = vpack.c.bf16 %v4651_v11, %v4646_v10  ;;  %v5783_v1 = vld [vmem:[#allocation28_spill] sm:$0xff] }
 0x32c   :  { %v5746_v42 = vpack.c.bf16 %v4661_v19, %v4656_v15  ;;  %v5747_v17 = vpack.c.bf16 %v4672_v39, %v4667_v25  ;;  %v5752_v10 = vpack.c.bf16 %v4724_v47, %v4719_v45  ;;  %v5753_v11 = vpack.c.bf16 %v4734_v21, %v4729_v60  ;;  %v5768_v45 = vld [vmem:[#allocation13_spill] sm:$0xff]  ;;  %v5769_v47 = vld [vmem:[#allocation14_spill] sm:$0xff]  ;;  %v5770_v60 = vld [vmem:[#allocation15_spill] sm:$0xff] }
 0x32d   :  { %v5754_v15 = vpack.c.bf16 %v4740_v31, %v4737_v20  ;;  %v5755_v19 = vpack.c.bf16 %v4744_v9, %v4742_v22  ;;  %v5756_v25 = vpack.c.bf16 %v4748_v52, %v4746_v57  ;;  %v5757_v39 = vpack.c.bf16 %v4752_v27, %v4750_v53  ;;  %v5771_v21 = vld [vmem:[#allocation16_spill] sm:$0xff]  ;;  %v5772_v20 = vld [vmem:[#allocation17_spill] sm:$0xff]  ;;  %v5773_v31 = vld [vmem:[#allocation18_spill] sm:$0xff] }
 0x32e   :  { %3600 = vmatpush1.bf16.msra.mxu0 %v5029_v23  ;;  %3744 = vmatpush1.bf16.msra.mxu1 %v5041_v43  ;;  %v5763_v9 = vpack.c.bf16 %v4771_v48, %v5762_v26  ;;  %v5764_v22 = vpack.c.bf16 %v5650_v41, %v5649_v5  ;;  %v5774_v57 = vld [vmem:[#allocation19_spill] sm:$0xff]  ;;  %v5775_v52 = vld [vmem:[#allocation20_spill] sm:$0xff]  ;;  %v5776_v53 = vld [vmem:[#allocation21_spill] sm:$0xff] }
 0x32f   :  { %3602 = vmatprep.subr.bf16.mxu0 %v5739_v29  ;;  %3746 = vmatprep.subr.bf16.mxu1 %v5740_v8  ;;  %v5777_v27 = vld [vmem:[#allocation22_spill] sm:$0xff]  ;;  %v5780_v48 = vld [vmem:[#allocation25_spill] sm:$0xff]  ;;  %v5784_v41 = vld [vmem:[#allocation32_spill] sm:$0xff] }
 0x330   :  { %v5785_v43 = vld [vmem:[#allocation33_spill] sm:$0xff]  ;;  %v5786_v23 = vld [vmem:[#allocation34_spill] sm:$0xff]  ;;  %v5787_v5 = vld [vmem:[#allocation35_spill] sm:$0xff] }
 0x331   :  { %1621 = vmatmul.mubr.f32.vlgmr.msra.gmra.mrb[2].mxu0 %v5211_v37  ;;  %2372 = vmatmul.mubr.f32.vlgmr.msra.gmra.mrb[2].mxu1 %v5211_v37  ;;  %v5798_v29 = vld [vmem:[#allocation66_spill] sm:$0xff]  ;;  %v5799_v8 = vld [vmem:[#allocation67_spill] sm:$0xff] }
 0x332   :  { %3604 = vmatpush1.bf16.msra.mxu0 %v5741_v62  ;;  %3748 = vmatpush1.bf16.msra.mxu1 %v5742_v58  ;;  %v5800_v62 = vld [vmem:[#allocation68_spill] sm:$0xff]  ;;  %v5801_v58 = vld [vmem:[#allocation69_spill] sm:$0xff] }
 0x333   :  { %3606 = vmatprep.subr.bf16.mxu0 %v5743_v28  ;;  %3750 = vmatprep.subr.bf16.mxu1 %v5744_v49  ;;  %v5803_v28 = vld [vmem:[#allocation71_spill] sm:$0xff]  ;;  %v5804_v49 = vld [vmem:[#allocation72_spill] sm:$0xff] }
 0x334   :  { %1739 = vmatprep.mubr.f32.mxu0 %v5724_v33  ;;  %2490 = vmatprep.mubr.f32.mxu1 %v5724_v33 }
 0x336   :  { %3608 = vmatpush1.bf16.msra.mxu0 %v5745_v50  ;;  %3752 = vmatpush1.bf16.msra.mxu1 %v5746_v42  ;;  %v5805_v50 = vld [vmem:[#allocation73_spill] sm:$0xff]  ;;  %v5806_v42 = vld [vmem:[#allocation74_spill] sm:$0xff] }
 0x337   :  { %3610 = vmatprep.subr.bf16.mxu0 %v5747_v17  ;;  %3754 = vmatprep.subr.bf16.mxu1 %v5748_v36  ;;  %v5807_v17 = vld [vmem:[#allocation75_spill] sm:$0xff]  ;;  %v5808_v36 = vld [vmem:[#allocation76_spill] sm:$0xff] }
 0x33a   :  { %3612 = vmatpush1.bf16.msra.mxu0 %v5749_v13  ;;  %3756 = vmatpush1.bf16.msra.mxu1 %v5750_v14  ;;  %v5809_v13 = vld [vmem:[#allocation77_spill] sm:$0xff]  ;;  %v5810_v14 = vld [vmem:[#allocation78_spill] sm:$0xff] }
 0x33b   :  { %3614 = vmatprep.subr.bf16.mxu0 %v5751_v61  ;;  %3758 = vmatprep.subr.bf16.mxu1 %v5752_v10  ;;  %v5811_v61 = vld [vmem:[#allocation79_spill] sm:$0xff]  ;;  %v5812_v10 = vld [vmem:[#allocation80_spill] sm:$0xff] }
 0x33e   :  { %3616 = vmatpush1.bf16.msra.mxu0 %v5753_v11  ;;  %3760 = vmatpush1.bf16.msra.mxu1 %v5754_v15  ;;  %v5813_v11 = vld [vmem:[#allocation81_spill] sm:$0xff] }
 0x33f   :  { %3618 = vmatprep.subr.bf16.mxu0 %v5755_v19  ;;  %3762 = vmatprep.subr.bf16.mxu1 %v5756_v25  ;;  %v1310_v19 = vld [vmem:[%s5419_s3] sm:$0xf]  ;;  %s3964_s3 = scalar_lea.vmem %s2848_s29, 512 }
 0x340   :  { %p3965_p10 = scmp.ne.s32.totalorder %s2848_s29, %s3964_s3  ;;  %p3970_p12 = scmp.lt.s32.totalorder %s3964_s3, %s3964_s3 }
 0x342   :  { %3620 = vmatpush1.bf16.msra.mxu0 %v5757_v39  ;;  %3764 = vmatpush1.bf16.msra.mxu1 %v5758_v54  ;;  %p3971_p13 = por %p3970_p12, %p3969_p11 }
 0x343   :  { %3622 = vmatprep.subr.bf16.mxu0 %v5761_v16  ;;  %3766 = vmatprep.subr.bf16.mxu1 %v5763_v9 }
 0x344   :  { %p3972_p0 = pnand %p3971_p13, %p3965_p10 }
 0x346   :  { %3624 = vmatpush1.bf16.msra.mxu0 %v5764_v22  ;;  %3768 = vmatpush1.bf16.msra.mxu1 %v5767_v44 }
 0x347   :  { %3626 = vmatprep.subr.bf16.mxu0 %v5768_v45  ;;  %3770 = vmatprep.subr.bf16.mxu1 %v5769_v47 }
 0x349   :  { %1742 = vmatmul.mubr.f32.vlgmr.msra.gmra.mrb[2].mxu0 %v1425_v18  ;;  %2493 = vmatmul.mubr.f32.vlgmr.msra.gmra.mrb[2].mxu1 %v1425_v18  ;;  %v5788_v18 = vld [vmem:[#allocation36_spill] sm:$0xff] }
 0x34a   :  { %3628 = vmatpush1.bf16.msra.mxu0 %v5770_v60  ;;  %3772 = vmatpush1.bf16.msra.mxu1 %v5771_v21 }
 0x34b   :  { %3630 = vmatprep.subr.bf16.mxu0 %v5772_v20  ;;  %3774 = vmatprep.subr.bf16.mxu1 %v5773_v31 }
 0x34c   :  { %1836 = vmatprep.mubr.f32.mxu0 %v5724_v33  ;;  %2587 = vmatprep.mubr.f32.mxu1 %v5724_v33 }
 0x34e   :  { %3632 = vmatpush1.bf16.msra.mxu0 %v5774_v57  ;;  %3776 = vmatpush1.bf16.msra.mxu1 %v5775_v52 }
 0x34f   :  { %3634 = vmatprep.subr.bf16.mxu0 %v5776_v53  ;;  %3778 = vmatprep.subr.bf16.mxu1 %v5777_v27 }
 0x352   :  { %3636 = vmatpush1.bf16.msra.mxu0 %v5778_v24  ;;  %3780 = vmatpush1.bf16.msra.mxu1 %v5779_v63 }
 0x353   :  { %3638 = vmatprep.subr.bf16.mxu0 %v5780_v48  ;;  %3782 = vmatprep.subr.bf16.mxu1 %v5781_v12 }
 0x356   :  { %3640 = vmatpush1.bf16.msra.mxu0 %v5782_v0  ;;  %3784 = vmatpush1.bf16.msra.mxu1 %v5783_v1 }
 0x357   :  { %3642 = vmatprep.subr.bf16.mxu0 %v5784_v41  ;;  %3786 = vmatprep.subr.bf16.mxu1 %v5785_v43 }
 0x35a   :  { %3644 = vmatpush1.bf16.msra.mxu0 %v5786_v23  ;;  %3788 = vmatpush1.bf16.msra.mxu1 %v5787_v5 }
 0x35b   :  { %3646 = vmatprep.subr.bf16.mxu0 %v5788_v18  ;;  %3790 = vmatprep.subr.bf16.mxu1 %v5789_v51 }
 0x35e   :  { %3648 = vmatpush1.bf16.msra.mxu0 %v5790_v55  ;;  %3792 = vmatpush1.bf16.msra.mxu1 %v5791_v6 }
 0x35f   :  { %3650 = vmatprep.subr.bf16.mxu0 %v5792_v35  ;;  %3794 = vmatprep.subr.bf16.mxu1 %v5793_v38 }
 0x361   :  { %1840 = vmatmul.mubr.f32.vlgmr.msra.gmra.mrb[2].mxu0 %v5214_v59  ;;  %2591 = vmatmul.mubr.f32.vlgmr.msra.gmra.mrb[2].mxu1 %v5214_v59  ;;  %v5802_v59 = vld [vmem:[#allocation70_spill] sm:$0xff] }
 0x362   :  { %3652 = vmatpush1.bf16.msra.mxu0 %v5794_v56  ;;  %3796 = vmatpush1.bf16.msra.mxu1 %v5795_v46 }
 0x363   :  { %3654 = vmatprep.subr.bf16.mxu0 %v5796_v7  ;;  %3798 = vmatprep.subr.bf16.mxu1 %v5797_v30 }
 0x364   :  { %1982 = vmatprep.mubr.f32.mxu0 %v5724_v33  ;;  %2733 = vmatprep.mubr.f32.mxu1 %v5724_v33 }
 0x366   :  { %3656 = vmatpush1.bf16.msra.mxu0 %v5798_v29  ;;  %3800 = vmatpush1.bf16.msra.mxu1 %v5799_v8 }
 0x367   :  { %3658 = vmatprep.subr.bf16.mxu0 %v5800_v62  ;;  %3802 = vmatprep.subr.bf16.mxu1 %v5801_v58 }
 0x36a   :  { %3660 = vmatpush1.bf16.msra.mxu0 %v5802_v59  ;;  %3804 = vmatpush1.bf16.msra.mxu1 %v5803_v28 }
 0x36b   :  { %3662 = vmatprep.subr.bf16.mxu0 %v5804_v49  ;;  %3806 = vmatprep.subr.bf16.mxu1 %v5805_v50 }
 0x36e   :  { %3664 = vmatpush1.bf16.msra.mxu0 %v5806_v42  ;;  %3808 = vmatpush1.bf16.msra.mxu1 %v5807_v17 }
 0x36f   :  { %3666 = vmatprep.subr.bf16.mxu0 %v5808_v36  ;;  %3810 = vmatprep.subr.bf16.mxu1 %v5809_v13 }
 0x372   :  { %3668 = vmatpush1.bf16.msra.mxu0 %v5810_v14  ;;  %3812 = vmatpush1.bf16.msra.mxu1 %v5811_v61 }
 0x373   :  { %3670 = vmatprep.subr.bf16.mxu0 %v5812_v10  ;;  %3814 = vmatprep.subr.bf16.mxu1 %v5813_v11 }
 0x376   :  { %3672 = vmatpush1.bf16.msra.mxu0 %v5205_v40  ;;  %3816 = vmatpush1.bf16.msra.mxu1 %v5207_v2  ;;  %v1312_v40 = vlaneseq }
 0x377   :  { %3674 = vmatprep.subr.bf16.mxu0 %v5768_v45  ;;  %3818 = vmatprep.subr.bf16.mxu1 %v5769_v47 }
 0x378   :  { %v1313_v2 = vshrl.u32 %v1312_v40, 7 }
 0x379   :  { %1984 = vmatmul.mubr.f32.vlgmr.msra.gmra.mrb[2].mxu0 %v5211_v37  ;;  %2735 = vmatmul.mubr.f32.vlgmr.msra.gmra.mrb[2].mxu1 %v5211_v37 }
 0x37a   :  { %3676 = vmatpush1.bf16.msra.mxu0 %v5770_v60  ;;  %3820 = vmatpush1.bf16.msra.mxu1 %v5771_v21  ;;  %v1322_v15 = vsub.s32 2, %v1313_v2  ;;  %v1318_v25 = vsub.s32 1, %v1313_v2  ;;  %v1326_v39 = vsub.s32 3, %v1313_v2 }
 0x37b   :  { %3678 = vmatprep.subr.bf16.mxu0 %v5772_v20  ;;  %3822 = vmatprep.subr.bf16.mxu1 %v5773_v31 }
 0x37c   :  { %2078 = vmatprep.mubr.f32.mxu0 %v5724_v33  ;;  %2829 = vmatprep.mubr.f32.mxu1 %v5724_v33  ;;  %v1314_v33 = vsub.s32 0, %v1313_v2  ;;  %v1323_v3 = vrot.slane %v1310_v19, %v1322_v15  ;;  %v1319_v4 = vrot.slane %v1310_v19, %v1318_v25  ;;  %v1327_v16 = vrot.slane %v1310_v19, %v1326_v39 }
 0x37e   :  { %3680 = vmatpush1.bf16.msra.mxu0 %v5774_v57  ;;  %3824 = vmatpush1.bf16.msra.mxu1 %v5775_v52  ;;  %v1315_v54 = vrot.slane %v1310_v19, %v1314_v33 }
 0x37f   :  { %3682 = vmatprep.subr.bf16.mxu0 %v5776_v53  ;;  %3826 = vmatprep.subr.bf16.mxu1 %v5777_v27 }
 0x382   :  { %3684 = vmatpush1.bf16.msra.mxu0 %v5778_v24  ;;  %3828 = vmatpush1.bf16.msra.mxu1 %v5779_v63 }
 0x383   :  { %3686 = vmatprep.subr.bf16.mxu0 %v5780_v48  ;;  %3830 = vmatprep.subr.bf16.mxu1 %v5781_v12 }
 0x386   :  { %3688 = vmatpush1.bf16.msra.mxu0 %v5782_v0  ;;  %3832 = vmatpush1.bf16.msra.mxu1 %v5783_v1 }
 0x387   :  { %3690 = vmatprep.subr.bf16.mxu0 %v5784_v41  ;;  %3834 = vmatprep.subr.bf16.mxu1 %v5785_v43 }
 0x38a   :  { %3692 = vmatpush1.bf16.msra.mxu0 %v5786_v23  ;;  %3836 = vmatpush1.bf16.msra.mxu1 %v5787_v5 }
 0x38b   :  { %3694 = vmatprep.subr.bf16.mxu0 %v5788_v18  ;;  %3838 = vmatprep.subr.bf16.mxu1 %v5789_v51 }
 0x38e   :  { %3696 = vmatpush1.bf16.msra.mxu0 %v5790_v55  ;;  %3840 = vmatpush1.bf16.msra.mxu1 %v5791_v6 }
 0x391   :  { %2080 = vmatmul.mubr.f32.vlgmr.msra.gmra.mrb[2].mxu0 %v5211_v37  ;;  %2831 = vmatmul.mubr.f32.vlgmr.msra.gmra.mrb[2].mxu1 %v5211_v37 }
 0x464   :  { %v2081_v26 = vpop.f32.mrb[2].mxu0  ;;  %v2832_v9 = vpop.f32.mrb[2].mxu1 }
 0x465   :  { %v3841_v22 = vadd.f32 %v2081_v26, %v1315_v54  ;;  %v3843_v37 = vadd.f32 %v2832_v9, %v1323_v3  ;;  %v2083_v32 = vpop.f32.mrb[3].mxu0  ;;  %v2834_v34 = vpop.f32.mrb[3].mxu1 }
 0x466   :  { %v3842_v44 = vadd.f32 %v2083_v32, %v1319_v4  ;;  %v3844_v45 = vadd.f32 %v2834_v34, %v1327_v16 }
 0x467   :  { %2837 = vst [vmem:[#allocation8] sm:$0xff] %v3841_v22  ;;  %2839 = vst [vmem:[#allocation8 + $0x10] sm:$0xff] %v3843_v37 }
 0x468   :  { %2838 = vst [vmem:[#allocation8 + $0x8] sm:$0xff] %v3842_v44  ;;  %2840 = vst [vmem:[#allocation8 + $0x18] sm:$0xff] %v3844_v45 }
 0x469   :  { %3975 = shalt.err (!%p3972_p0)
}
 0x46a   :  { %s3976_s6 = scalar_lea.hbm %s5420_s4, 512 }
 0x46b   :  { %p3977_p1 = scmp.ne.s32.totalorder %s5420_s4, %s3976_s6  ;;  %p3980_p2 = scmp.lt.u32.totalorder %s3976_s6, %s5420_s4 }
 0x46d   :  { %p3982_p3 = pnand %p3980_p2, %p3977_p1 }
 0x46f   :  { %3985 = shalt.err (!%p3982_p3)
}
 0x470   :  { %2850 = dma.vmem_to_hbm [thread:$0]  %s2848_s29, 512, %s5420_s4, [#allocation4]  }
 0x471   :  { %3990 = dma.done.wait [#allocation4], 512  }
 0x472   :  { %3991 = vsyncadd [#allocation4], 4294966784 }
 0x473   :  { %2854 = vsyncpa [#allocation3], 1 }
 0x474   :  { %2855 = vsyncpa [#allocation6], 1 }
 0x475   :  { %2856 = vsyncpa [#allocation4], 1 }

</bundles_post_ra>
